<compile_context>
chip_gen: v7x
topology: tpu7x:2x2x1
jax: 0.10.0
libtpu: 0.0.40
codegen_flags: <defaults>
</compile_context>

<pallas_src>
import jax
import jax.numpy as jnp
import numpy as np
from jax import lax
from jax.experimental import pallas as pl
from jax.experimental.pallas import tpu as pltpu

EPS = 1e-5
LANE = 128                  # all channel dims padded to the TPU lane width
MXU_DTYPE = jnp.bfloat16    # matmul input dtype (f32 accumulate)


# ------------------------------ small helpers --------------------------------

def _round_up(x, m):
    return (x + m - 1) // m * m


def _pick_rows(m, cap=2048):
    """Largest sublane-aligned divisor of m that is <= cap and (if possible)
    leaves >= 2 grid steps so both v7x TensorCores get work."""
    divs = [d for d in range(1, min(m, cap) + 1) if m % d == 0]
    good = [d for d in divs if d % 8 == 0 and m // d >= 2]
    if good:
        return max(good)
    good = [d for d in divs if d % 8 == 0]
    if good:
        return max(good)
    return m  # full block fallback (still satisfies the (8,128) rule)


def _pick_toh(oh, ow, n, cap=512):
    """Output-row tile for the conv kernel: toh | oh, toh*ow <= cap rows,
    preferring tilings that leave n * (oh//toh) >= 2 grid steps (megacore)."""
    divs = [d for d in range(1, oh + 1)
            if oh % d == 0 and d * ow <= cap and (d * ow) % 8 == 0]
    if not divs:
        return oh
    good = [d for d in divs if n * (oh // d) >= 2]
    return max(good) if good else max(divs)


def _parity_stack(xp, s, hq, wq):
    """(N, Hp, Wp, C) padded NHWC -> (N, s*s*hq, wq, C): the s*s stride-s
    parity sub-images stacked along rows (space-to-batch).  A stride-s conv
    then only needs contiguous slices of this array inside the kernel.
    Total size == input size (no 9x im2col expansion)."""
    subs = []
    for pi in range(s):
        for pj in range(s):
            sub = xp[:, pi::s, pj::s, :][:, :hq, :wq, :]
            ph, pw = hq - sub.shape[1], wq - sub.shape[2]
            if ph or pw:
                sub = jnp.pad(sub, ((0, 0), (0, ph), (0, pw), (0, 0)))
            subs.append(sub)
    return jnp.concatenate(subs, axis=1) if len(subs) > 1 else subs[0]


def _prep_w3(w, cin_p, cout_p):
    """PyTorch OIHW 3x3 weight -> (kh, kw*Cin_p, Cout_p) bf16.
    Column taps are pre-concatenated along K so the kernel can fold the kw
    shifted LHS slices into one contraction per row tap."""
    cout, cin, kh, kw = w.shape
    wm = jnp.transpose(w, (2, 3, 1, 0))                  # (kh, kw, cin, cout)
    wm = jnp.pad(wm, ((0, 0), (0, 0),
                      (0, cin_p - cin), (0, cout_p - cout)))
    return wm.reshape(kh, kw * cin_p, cout_p).astype(MXU_DTYPE)


def _prep_w1(w, cin_p, cout_p):
    """PyTorch (Cout, Cin, 1, 1) projection weight -> (Cin_p, Cout_p) bf16."""
    cout, cin = w.shape[0], w.shape[1]
    wm = jnp.pad(w.reshape(cout, cin).T,
                 ((0, cin_p - cin), (0, cout_p - cout)))
    return wm.astype(MXU_DTYPE)


def _finish_stats(psum, pssq, m):
    """Reduce the per-tile partial stats (tiny arrays) in XLA."""
    cp = psum.shape[-1]
    s = psum.reshape(-1, 8, cp)[:, 0, :].sum(axis=0)
    q = pssq.reshape(-1, 8, cp)[:, 0, :].sum(axis=0)
    mean = s / m
    # NOTE: E[x^2]-mean^2 can cancel for large-magnitude activations; fine at
    # these scales (clamped at 0).
    # TODO(synk): switch to a Welford / two-pass variance for production data.
    var = jnp.maximum(q / m - mean * mean, 0.0)   # biased (training-mode) var
    return mean, var


def _bn_fold(mean, var, gamma, beta, cp):
    g = jnp.pad(gamma, (0, cp - gamma.shape[0]), constant_values=1.0)
    b = jnp.pad(beta, (0, cp - beta.shape[0]))
    scale = g / jnp.sqrt(var + EPS)
    shift = b - mean * scale
    return scale[None].astype(jnp.float32), shift[None].astype(jnp.float32)


# --------------------- fused conv (+shortcut) + stats kernel -----------------

def _make_conv_kernel(kgroups, toh, ow, hq, n_t, sc_pos):
    """Conv as a value-accumulated sum of K-folded matmuls (one per row tap),
    with per-tile channel sum / sum^2 epilogue reusing the accumulator, and an
    optional fused 1x1 projection shortcut + its stats."""
    rows = toh * ow

    def kernel(x_ref, w_ref, *rest):
        if sc_pos is not None:
            ws_ref, y_ref, ps_ref, pq_ref, ys_ref, pss_ref, pqs_ref = rest
        else:
            y_ref, ps_ref, pq_ref = rest

        if n_t == 1:
            oh0 = 0                                   # fully static slices
        else:
            oh0 = pl.multiple_of(pl.program_id(1) * toh, toh)

        def lhs_at(par, di, dj):
            blk = x_ref[0, pl.ds(oh0 + par * hq + di, toh), pl.ds(dj, ow), :]
            return blk.reshape(rows, blk.shape[-1])

        def stats8(v, ref):
            s = jnp.sum(v, axis=0, keepdims=True)      # (1, C)
            ref[...] = jnp.broadcast_to(s, ref.shape)  # lane/sublane-dense

        # main conv: kh dots with K = kw*Cin_p, accumulated in a value.
        acc = None
        for g, taps in enumerate(kgroups):
            if len(taps) > 1:
                # channel-dim concat of 128-lane-aligned pieces: cheap.
                lhs = jnp.concatenate([lhs_at(*t) for t in taps], axis=-1)
            else:
                lhs = lhs_at(*taps[0])
            d = jnp.dot(lhs, w_ref[g], preferred_element_type=jnp.float32)
            acc = d if acc is None else acc + d
        y_ref[...] = acc
        stats8(acc, ps_ref)           # fused BN batch-stats epilogue
        stats8(acc * acc, pq_ref)

        if sc_pos is not None:        # fused 1x1 stride-s projection shortcut
            ys = jnp.dot(lhs_at(*sc_pos), ws_ref[...],
                         preferred_element_type=jnp.float32)
            ys_ref[...] = ys
            stats8(ys, pss_ref)
            stats8(ys * ys, pqs_ref)

    return kernel


def conv_stats(xs, w, *, stride, kh, kw, oh, ow, hq, ws=None):
    """xs: parity-split padded NHWC input (N, s*s*hq, wq, Cin_p), bf16.
       w : (kh, kw*Cin_p, Cout_p) bf16.  ws: optional (Cin_p, Cout_p) bf16.
       Returns y (M, Cout_p) f32 + per-tile stats (and shortcut versions)."""
    n, srows, wq, cp_in = xs.shape
    cp_out = w.shape[-1]
    toh = _pick_toh(oh, ow, n)
    n_t = oh // toh
    rows = toh * ow
    m = n * oh * ow
    assert rows % 8 == 0 and cp_out % LANE == 0, (
        "conv tile rows must be sublane-aligned and Cout lane-padded")

    # (parity index, row offset, col offset) of each tap, grouped by row tap
    # so the kw column taps fold into the contraction dimension.
    kgroups = [[((ki % stride) * stride + (kj % stride),
                 ki // stride, kj // stride)
                for kj in range(kw)]
               for ki in range(kh)]
    if ws is not None:
        # 1x1 stride-s shortcut reads x[r*s, c*s] = padded image at offset P=1
        # (valid only for the pad=1, 3x3 main conv, stride in {1,2} case).
        assert kh == 3 and kw == 3 and stride in (1, 2)
        P = 1
        sc_pos = ((P % stride) * stride + (P % stride),
                  P // stride, P // stride)
    else:
        sc_pos = None

    kernel = _make_conv_kernel(kgroups, toh, ow, hq, n_t, sc_pos)

    y_shape = jax.ShapeDtypeStruct((m, cp_out), jnp.float32)
    st_shape = jax.ShapeDtypeStruct((n * n_t * 8, cp_out), jnp.float32)
    y_spec = pl.BlockSpec((rows, cp_out), lambda i, t: (i * n_t + t, 0))
    st_spec = pl.BlockSpec((8, cp_out), lambda i, t: (i * n_t + t, 0))

    in_specs = [pl.BlockSpec((1, srows, wq, cp_in),
                             lambda i, t: (i, 0, 0, 0)),
                pl.BlockSpec((kh, kw * cp_in, cp_out),
                             lambda i, t: (0, 0, 0))]
    inputs = [xs, w]
    out_shape = [y_shape, st_shape, st_shape]
    out_specs = [y_spec, st_spec, st_spec]
    if ws is not None:
        in_specs.append(pl.BlockSpec((cp_in, cp_out), lambda i, t: (0, 0)))
        inputs.append(ws)
        out_shape += [y_shape, st_shape, st_shape]
        out_specs += [y_spec, st_spec, st_spec]

    # --- explicit VMEM budget (v7x: 64 MiB physical, 32 MiB scoped default) --
    x_blk = srows * wq * cp_in * 2
    w_blk = kh * kw * cp_in * cp_out * 2
    y_blk = rows * cp_out * 4
    st_blk = 8 * cp_out * 4
    need = 2 * (x_blk + w_blk + y_blk + 2 * st_blk)          # double-buffered
    if ws is not None:
        need += 2 * (cp_in * cp_out * 2 + y_blk + 2 * st_blk)
    need += kh * rows * (kw * cp_in) * 2 + rows * cp_out * 4  # LHS + acc values
    vmem_limit = int(min(64 * 2 ** 20, max(2 * need, 16 * 2 ** 20)))

    # --- cost estimate hint for XLA's scheduler ------------------------------
    flops = 2 * m * (kh * kw * cp_in) * cp_out
    bytes_accessed = xs.size * 2 + w.size * 2 + m * cp_out * 4 \
        + 2 * n * n_t * 8 * cp_out * 4
    if ws is not None:
        flops += 2 * m * cp_in * cp_out
        bytes_accessed += ws.size * 2 + m * cp_out * 4 \
            + 2 * n * n_t * 8 * cp_out * 4
    cost = pl.CostEstimate(flops=int(flops), transcendentals=0,
                           bytes_accessed=int(bytes_accessed))

    return pl.pallas_call(
        kernel,
        out_shape=tuple(out_shape),
        grid=(n, n_t),
        in_specs=in_specs,
        out_specs=tuple(out_specs),
        compiler_params=pltpu.CompilerParams(
            dimension_semantics=("parallel", "parallel"),
            vmem_limit_bytes=vmem_limit),
        cost_estimate=cost,
    )(*inputs)


# ------------------------- fused elementwise kernels --------------------------

def _bn_relu_pad(y1, sc, sh, n, oh, ow, cp):
    """BN1 + ReLU written directly into the zero-padded conv2 input buffer
    (N, oh+2, ow+2, C) in bf16 -> no flat-a1 HBM round trip, no jnp.pad copy."""
    hp, wp = oh + 2, ow + 2
    rows = oh * ow

    def kernel(y_ref, sc_ref, sh_ref, o_ref):
        o_ref[...] = jnp.zeros_like(o_ref)               # zero spatial border
        a = jnp.maximum(y_ref[...] * sc_ref[...] + sh_ref[...], 0.0)
        o_ref[0, pl.ds(1, oh), pl.ds(1, ow), :] = (
            a.reshape(oh, ow, cp).astype(o_ref.dtype))

    return pl.pallas_call(
        kernel,
        out_shape=jax.ShapeDtypeStruct((n, hp, wp, cp), MXU_DTYPE),
        grid=(n,),
        in_specs=[pl.BlockSpec((rows, cp), lambda i: (i, 0)),
                  pl.BlockSpec((1, cp), lambda i: (0, 0)),
                  pl.BlockSpec((1, cp), lambda i: (0, 0))],
        out_specs=pl.BlockSpec((1, hp, wp, cp), lambda i: (i, 0, 0, 0)),
        compiler_params=pltpu.CompilerParams(
            dimension_semantics=("parallel",)),
    )(y1, sc, sh)


def _add_bn_relu_proj_kernel(y_ref, sc_ref, sh_ref, s_ref, ssc_ref, ssh_ref,
                             o_ref):
    main = y_ref[...] * sc_ref[...] + sh_ref[...]
    short = s_ref[...] * ssc_ref[...] + ssh_ref[...]
    o_ref[...] = jnp.maximum(main + short, 0.0).astype(o_ref.dtype)


def _add_bn_relu_id_kernel(y_ref, sc_ref, sh_ref, s_ref, o_ref):
    # identity shortcut: no scale/shift FMA on the shortcut path
    o_ref[...] = jnp.maximum(
        y_ref[...] * sc_ref[...] + sh_ref[...] + s_ref[...], 0.0
    ).astype(o_ref.dtype)


def _elementwise(kernel, arrays, out_dtype):
    m, cp = arrays[0].shape
    tm = _pick_rows(m)
    row_spec = pl.BlockSpec((tm, cp), lambda i: (i, 0))
    vec_spec = pl.BlockSpec((1, cp), lambda i: (0, 0))
    in_specs = [row_spec if a.shape[0] != 1 else vec_spec for a in arrays]
    return pl.pallas_call(
        kernel,
        out_shape=jax.ShapeDtypeStruct((m, cp), out_dtype),
        grid=(m // tm,),
        in_specs=in_specs,
        out_specs=row_spec,
        compiler_params=pltpu.CompilerParams(
            dimension_semantics=("parallel",)),
    )(*arrays)


# ------------------------------ block forward --------------------------------

def residual_block_forward(x, params, stride):
    """x: NCHW f32 -> NCHW f32, matching ResidualBlock.forward (train mode)."""
    n, cin, h, w = x.shape
    cout, _, kh, kw = params["w1"].shape
    pad = 1
    oh = (h + 2 * pad - kh) // stride + 1
    ow = (w + 2 * pad - kw) // stride + 1
    m = n * oh * ow
    cin_p, cout_p = _round_up(cin, LANE), _round_up(cout, LANE)
    downsample = (stride != 1) or (cin != cout)

    # layout: NCHW -> NHWC once, channels zero-padded to the 128-lane width
    x_nhwc = jnp.pad(jnp.transpose(x, (0, 2, 3, 1)),
                     ((0, 0), (0, 0), (0, 0), (0, cin_p - cin)))
    xp1 = jnp.pad(x_nhwc, ((0, 0), (pad, pad), (pad, pad), (0, 0)))
    hq1 = oh + (kh - 1) // stride
    wq1 = ow + (kw - 1) // stride
    xs1 = _parity_stack(xp1.astype(MXU_DTYPE), stride, hq1, wq1)

    w1 = _prep_w3(params["w1"], cin_p, cout_p)
    w2 = _prep_w3(params["w2"], cout_p, cout_p)

    # conv1 (+ fused 1x1 projection shortcut) + fused BN batch stats
    if downsample:
        ws = _prep_w1(params["ws"], cin_p, cout_p)
        y1, ps1, pq1, ys, pss, pqs = conv_stats(
            xs1, w1, stride=stride, kh=kh, kw=kw, oh=oh, ow=ow, hq=hq1, ws=ws)
    else:
        assert stride == 1 and cin == cout, (
            "identity shortcut requires stride==1 and cin==cout")
        y1, ps1, pq1 = conv_stats(
            xs1, w1, stride=stride, kh=kh, kw=kw, oh=oh, ow=ow, hq=hq1)

    m1, v1 = _finish_stats(ps1, pq1, m)
    sc1, sh1 = _bn_fold(m1, v1, params["g1"], params["b1"], cout_p)
    # BN1 + ReLU, written straight into the padded bf16 conv2 input buffer
    xs2 = _bn_relu_pad(y1, sc1, sh1, n, oh, ow, cout_p)

    # conv2 (stride 1, parity stack is the identity) + fused BN batch stats
    y2, ps2, pq2 = conv_stats(xs2, w2, stride=1, kh=3, kw=3,
                              oh=oh, ow=ow, hq=oh + 2)
    m2, v2 = _finish_stats(ps2, pq2, m)
    sc2, sh2 = _bn_fold(m2, v2, params["g2"], params["b2"], cout_p)

    # final fused add + BN + ReLU
    if downsample:
        ms, vs = _finish_stats(pss, pqs, m)
        scs, shs = _bn_fold(ms, vs, params["gs"], params["bs"], cout_p)
        out = _elementwise(_add_bn_relu_proj_kernel,
                           [y2, sc2, sh2, ys, scs, shs], jnp.float32)
    else:
        x_flat = x_nhwc.reshape(m, cin_p)          # identity shortcut, f32
        out = _elementwise(_add_bn_relu_id_kernel,
                           [y2, sc2, sh2, x_flat], jnp.float32)

    # single channels-last -> NCHW conversion at the block output
    return jnp.transpose(out[:, :cout].reshape(n, oh, ow, cout), (0, 3, 1, 2))


# ----------------------------- pure-JAX reference ------------------------------

def ref_forward(x, params, stride):
    def conv(xx, ww, s, pad):
        return lax.conv_general_dilated(
            xx, ww, (s, s), [(pad, pad), (pad, pad)],
            dimension_numbers=("NCHW", "OIHW", "NCHW"))

    def bn(xx, g, b):
        mean = xx.mean(axis=(0, 2, 3), keepdims=True)
        var = ((xx - mean) ** 2).mean(axis=(0, 2, 3), keepdims=True)
        return ((xx - mean) / jnp.sqrt(var + EPS)) * g.reshape(1, -1, 1, 1) \
            + b.reshape(1, -1, 1, 1)

    y = jnp.maximum(bn(conv(x, params["w1"], stride, 1),
                       params["g1"], params["b1"]), 0.0)
    y = bn(conv(y, params["w2"], 1, 1), params["g2"], params["b2"])
    if "ws" in params:
        short = bn(conv(x, params["ws"], stride, 0),
                   params["gs"], params["bs"])
    else:
        short = x
    return jnp.maximum(y + short, 0.0)


# ------------------------------------ main ------------------------------------

if __name__ == "__main__":
    def make_params(key, cin, cout, downsample):
        keys = jax.random.split(key, 10)
        p = {
            "w1": jax.random.normal(keys[0], (cout, cin, 3, 3), jnp.float32) * 0.1,
            "g1": jax.random.uniform(keys[1], (cout,), jnp.float32, 0.5, 1.5),
            "b1": jax.random.normal(keys[2], (cout,), jnp.float32) * 0.1,
            "w2": jax.random.normal(keys[3], (cout, cout, 3, 3), jnp.float32) * 0.1,
            "g2": jax.random.uniform(keys[4], (cout,), jnp.float32, 0.5, 1.5),
            "b2": jax.random.normal(keys[5], (cout,), jnp.float32) * 0.1,
        }
        if downsample:
            p["ws"] = jax.random.normal(keys[6], (cout, cin, 1, 1), jnp.float32) * 0.1
            p["gs"] = jax.random.uniform(keys[7], (cout,), jnp.float32, 0.5, 1.5)
            p["bs"] = jax.random.normal(keys[8], (cout,), jnp.float32) * 0.1
        return p

    key = jax.random.PRNGKey(0)
    k1, k2, k3, k4 = jax.random.split(key, 4)

    # bf16 MXU inputs -> ~2^-9 relative rounding; tolerance sized accordingly.
    RTOL = ATOL = 4e-2

    # case 1: downsampling block (stride 2, 4 -> 8 channels, conv shortcut)
    x1 = jax.random.normal(k1, (2, 4, 16, 16), jnp.float32)
    p1 = make_params(k2, 4, 8, downsample=True)
    out1 = jax.block_until_ready(residual_block_forward(x1, p1, stride=2))
    ref1 = ref_forward(x1, p1, 2)
    np.testing.assert_allclose(np.asarray(out1), np.asarray(ref1),
                               rtol=RTOL, atol=ATOL)

    # case 2: identity block (stride 1, 8 -> 8 channels, identity shortcut)
    x2 = jax.random.normal(k3, (2, 8, 16, 16), jnp.float32)
    p2 = make_params(k4, 8, 8, downsample=False)
    out2 = jax.block_until_ready(residual_block_forward(x2, p2, stride=1))
    ref2 = ref_forward(x2, p2, 1)
    np.testing.assert_allclose(np.asarray(out2), np.asarray(ref2),
                               rtol=RTOL, atol=ATOL)

    print("KERNEL_OK")
</pallas_src>

<mosaic_0001>
module attributes {stable_mosaic.version = 11 : i64} {
  func.func @kernel(%arg0: i32, %arg1: i32, %arg2: memref<1x36x9x128xbf16, #tpu.memory_space<vmem>>, %arg3: memref<3x384x128xbf16, #tpu.memory_space<vmem>>, %arg4: memref<128x128xbf16, #tpu.memory_space<vmem>>, %arg5: memref<64x128xf32, #tpu.memory_space<vmem>>, %arg6: memref<8x128xf32, #tpu.memory_space<vmem>>, %arg7: memref<8x128xf32, #tpu.memory_space<vmem>>, %arg8: memref<64x128xf32, #tpu.memory_space<vmem>>, %arg9: memref<8x128xf32, #tpu.memory_space<vmem>>, %arg10: memref<8x128xf32, #tpu.memory_space<vmem>>) attributes {dimension_semantics = [#tpu.dimension_semantics<parallel>, #tpu.dimension_semantics<parallel>], iteration_bounds = array<i64: 2, 1>, scalar_prefetch = 0 : i64, scratch_operands = 0 : i64, tpu.core_type = #tpu.core_type<tc>, window_params = [{transform_indices = @transform_0, window_bounds = array<i64: 1, 36, 9, 128>}, {pipeline_mode = #tpu.pipeline_mode<synchronous>, transform_indices = @transform_1, window_bounds = array<i64: 3, 384, 128>}, {pipeline_mode = #tpu.pipeline_mode<synchronous>, transform_indices = @transform_2, window_bounds = array<i64: 128, 128>}, {transform_indices = @transform_3, window_bounds = array<i64: 64, 128>}, {transform_indices = @transform_4, window_bounds = array<i64: 8, 128>}, {transform_indices = @transform_5, window_bounds = array<i64: 8, 128>}, {transform_indices = @transform_6, window_bounds = array<i64: 64, 128>}, {transform_indices = @transform_7, window_bounds = array<i64: 8, 128>}, {transform_indices = @transform_8, window_bounds = array<i64: 8, 128>}]} {
    %c0 = arith.constant 0 : index
    %c0_0 = arith.constant 0 : index
    %c0_1 = arith.constant 0 : index
    %c0_2 = arith.constant 0 : index
    %0 = vector.load %arg2[%c0, %c0_0, %c0_1, %c0_2] : memref<1x36x9x128xbf16, #tpu.memory_space<vmem>>, vector<1x8x8x128xbf16>
    %1 = vector.shape_cast %0 : vector<1x8x8x128xbf16> to vector<8x8x128xbf16>
    %2 = vector.shape_cast %1 : vector<8x8x128xbf16> to vector<64x128xbf16>
    %c0_3 = arith.constant 0 : index
    %c9 = arith.constant 9 : index
    %c0_4 = arith.constant 0 : index
    %c0_5 = arith.constant 0 : index
    %3 = vector.load %arg2[%c0_3, %c9, %c0_4, %c0_5] : memref<1x36x9x128xbf16, #tpu.memory_space<vmem>>, vector<1x8x8x128xbf16>
    %4 = vector.shape_cast %3 : vector<1x8x8x128xbf16> to vector<8x8x128xbf16>
    %5 = vector.shape_cast %4 : vector<8x8x128xbf16> to vector<64x128xbf16>
    %c0_6 = arith.constant 0 : index
    %c0_7 = arith.constant 0 : index
    %c1 = arith.constant 1 : index
    %c0_8 = arith.constant 0 : index
    %6 = vector.load %arg2[%c0_6, %c0_7, %c1, %c0_8] : memref<1x36x9x128xbf16, #tpu.memory_space<vmem>>, vector<1x8x8x128xbf16>
    %7 = vector.shape_cast %6 : vector<1x8x8x128xbf16> to vector<8x8x128xbf16>
    %8 = vector.shape_cast %7 : vector<8x8x128xbf16> to vector<64x128xbf16>
    %9 = tpu.concatenate %2, %5, %8 in 1 : vector<64x128xbf16>, vector<64x128xbf16>, vector<64x128xbf16> -> vector<64x384xbf16>
    %c0_9 = arith.constant 0 : index
    %c0_10 = arith.constant 0 : index
    %c0_11 = arith.constant 0 : index
    %10 = vector.load %arg3[%c0_9, %c0_10, %c0_11] : memref<3x384x128xbf16, #tpu.memory_space<vmem>>, vector<1x384x128xbf16>
    %11 = vector.shape_cast %10 : vector<1x384x128xbf16> to vector<384x128xbf16>
    %cst = arith.constant dense<0.000000e+00> : vector<64x128xf32>
    %12 = tpu.matmul %9, %11, %cst {dimension_numbers = #tpu.dot_dimension_numbers<[1], [0], [0], [1], [0, 0, 1, 1], [], []>} : vector<64x384xbf16>, vector<384x128xbf16>, vector<64x128xf32> -> vector<64x128xf32>
    %c0_12 = arith.constant 0 : index
    %c18 = arith.constant 18 : index
    %c0_13 = arith.constant 0 : index
    %c0_14 = arith.constant 0 : index
    %13 = vector.load %arg2[%c0_12, %c18, %c0_13, %c0_14] : memref<1x36x9x128xbf16, #tpu.memory_space<vmem>>, vector<1x8x8x128xbf16>
    %14 = vector.shape_cast %13 : vector<1x8x8x128xbf16> to vector<8x8x128xbf16>
    %15 = vector.shape_cast %14 : vector<8x8x128xbf16> to vector<64x128xbf16>
    %c0_15 = arith.constant 0 : index
    %c27 = arith.constant 27 : index
    %c0_16 = arith.constant 0 : index
    %c0_17 = arith.constant 0 : index
    %16 = vector.load %arg2[%c0_15, %c27, %c0_16, %c0_17] : memref<1x36x9x128xbf16, #tpu.memory_space<vmem>>, vector<1x8x8x128xbf16>
    %17 = vector.shape_cast %16 : vector<1x8x8x128xbf16> to vector<8x8x128xbf16>
    %18 = vector.shape_cast %17 : vector<8x8x128xbf16> to vector<64x128xbf16>
    %c0_18 = arith.constant 0 : index
    %c18_19 = arith.constant 18 : index
    %c1_20 = arith.constant 1 : index
    %c0_21 = arith.constant 0 : index
    %19 = vector.load %arg2[%c0_18, %c18_19, %c1_20, %c0_21] : memref<1x36x9x128xbf16, #tpu.memory_space<vmem>>, vector<1x8x8x128xbf16>
    %20 = vector.shape_cast %19 : vector<1x8x8x128xbf16> to vector<8x8x128xbf16>
    %21 = vector.shape_cast %20 : vector<8x8x128xbf16> to vector<64x128xbf16>
    %22 = tpu.concatenate %15, %18, %21 in 1 : vector<64x128xbf16>, vector<64x128xbf16>, vector<64x128xbf16> -> vector<64x384xbf16>
    %c1_22 = arith.constant 1 : index
    %c0_23 = arith.constant 0 : index
    %c0_24 = arith.constant 0 : index
    %23 = vector.load %arg3[%c1_22, %c0_23, %c0_24] : memref<3x384x128xbf16, #tpu.memory_space<vmem>>, vector<1x384x128xbf16>
    %24 = vector.shape_cast %23 : vector<1x384x128xbf16> to vector<384x128xbf16>
    %cst_25 = arith.constant dense<0.000000e+00> : vector<64x128xf32>
    %25 = tpu.matmul %22, %24, %cst_25 {dimension_numbers = #tpu.dot_dimension_numbers<[1], [0], [0], [1], [0, 0, 1, 1], [], []>} : vector<64x384xbf16>, vector<384x128xbf16>, vector<64x128xf32> -> vector<64x128xf32>
    %26 = arith.addf %12, %25 : vector<64x128xf32>
    %c0_26 = arith.constant 0 : index
    %c1_27 = arith.constant 1 : index
    %c0_28 = arith.constant 0 : index
    %c0_29 = arith.constant 0 : index
    %27 = vector.load %arg2[%c0_26, %c1_27, %c0_28, %c0_29] : memref<1x36x9x128xbf16, #tpu.memory_space<vmem>>, vector<1x8x8x128xbf16>
    %28 = vector.shape_cast %27 : vector<1x8x8x128xbf16> to vector<8x8x128xbf16>
    %29 = vector.shape_cast %28 : vector<8x8x128xbf16> to vector<64x128xbf16>
    %c0_30 = arith.constant 0 : index
    %c10 = arith.constant 10 : index
    %c0_31 = arith.constant 0 : index
    %c0_32 = arith.constant 0 : index
    %30 = vector.load %arg2[%c0_30, %c10, %c0_31, %c0_32] : memref<1x36x9x128xbf16, #tpu.memory_space<vmem>>, vector<1x8x8x128xbf16>
    %31 = vector.shape_cast %30 : vector<1x8x8x128xbf16> to vector<8x8x128xbf16>
    %32 = vector.shape_cast %31 : vector<8x8x128xbf16> to vector<64x128xbf16>
    %c0_33 = arith.constant 0 : index
    %c1_34 = arith.constant 1 : index
    %c1_35 = arith.constant 1 : index
    %c0_36 = arith.constant 0 : index
    %33 = vector.load %arg2[%c0_33, %c1_34, %c1_35, %c0_36] : memref<1x36x9x128xbf16, #tpu.memory_space<vmem>>, vector<1x8x8x128xbf16>
    %34 = vector.shape_cast %33 : vector<1x8x8x128xbf16> to vector<8x8x128xbf16>
    %35 = vector.shape_cast %34 : vector<8x8x128xbf16> to vector<64x128xbf16>
    %36 = tpu.concatenate %29, %32, %35 in 1 : vector<64x128xbf16>, vector<64x128xbf16>, vector<64x128xbf16> -> vector<64x384xbf16>
    %c2 = arith.constant 2 : index
    %c0_37 = arith.constant 0 : index
    %c0_38 = arith.constant 0 : index
    %37 = vector.load %arg3[%c2, %c0_37, %c0_38] : memref<3x384x128xbf16, #tpu.memory_space<vmem>>, vector<1x384x128xbf16>
    %38 = vector.shape_cast %37 : vector<1x384x128xbf16> to vector<384x128xbf16>
    %cst_39 = arith.constant dense<0.000000e+00> : vector<64x128xf32>
    %39 = tpu.matmul %36, %38, %cst_39 {dimension_numbers = #tpu.dot_dimension_numbers<[1], [0], [0], [1], [0, 0, 1, 1], [], []>} : vector<64x384xbf16>, vector<384x128xbf16>, vector<64x128xf32> -> vector<64x128xf32>
    %40 = arith.addf %26, %39 : vector<64x128xf32>
    %c0_40 = arith.constant 0 : index
    %c0_41 = arith.constant 0 : index
    %41 = vector.load %arg5[%c0_40, %c0_41] : memref<64x128xf32, #tpu.memory_space<vmem>>, vector<64x128xf32>
    tpu.vector_store %arg5[%c0_40, %c0_41], %40 {strides = array<i32>} : memref<64x128xf32, #tpu.memory_space<vmem>>, vector<64x128xf32>,
    %cst_42 = arith.constant dense<0.000000e+00> : vector<128xf32>
    %42 = vector.multi_reduction <add>, %40, %cst_42 [0] : vector<64x128xf32> to vector<128xf32>
    %43 = vector.shape_cast %42 : vector<128xf32> to vector<1x128xf32>
    %44 = vector.shape_cast %43 : vector<1x128xf32> to vector<1x128xf32>
    %45 = vector.broadcast %44 : vector<1x128xf32> to vector<8x128xf32>
    %c0_43 = arith.constant 0 : index
    %c0_44 = arith.constant 0 : index
    %46 = vector.load %arg6[%c0_43, %c0_44] : memref<8x128xf32, #tpu.memory_space<vmem>>, vector<8x128xf32>
    tpu.vector_store %arg6[%c0_43, %c0_44], %45 {strides = array<i32>} : memref<8x128xf32, #tpu.memory_space<vmem>>, vector<8x128xf32>,
    %47 = arith.mulf %40, %40 : vector<64x128xf32>
    %cst_45 = arith.constant dense<0.000000e+00> : vector<128xf32>
    %48 = vector.multi_reduction <add>, %47, %cst_45 [0] : vector<64x128xf32> to vector<128xf32>
    %49 = vector.shape_cast %48 : vector<128xf32> to vector<1x128xf32>
    %50 = vector.shape_cast %49 : vector<1x128xf32> to vector<1x128xf32>
    %51 = vector.broadcast %50 : vector<1x128xf32> to vector<8x128xf32>
    %c0_46 = arith.constant 0 : index
    %c0_47 = arith.constant 0 : index
    %52 = vector.load %arg7[%c0_46, %c0_47] : memref<8x128xf32, #tpu.memory_space<vmem>>, vector<8x128xf32>
    tpu.vector_store %arg7[%c0_46, %c0_47], %51 {strides = array<i32>} : memref<8x128xf32, #tpu.memory_space<vmem>>, vector<8x128xf32>,
    %c0_48 = arith.constant 0 : index
    %c27_49 = arith.constant 27 : index
    %c0_50 = arith.constant 0 : index
    %c0_51 = arith.constant 0 : index
    %53 = vector.load %arg2[%c0_48, %c27_49, %c0_50, %c0_51] : memref<1x36x9x128xbf16, #tpu.memory_space<vmem>>, vector<1x8x8x128xbf16>
    %54 = vector.shape_cast %53 : vector<1x8x8x128xbf16> to vector<8x8x128xbf16>
    %55 = vector.shape_cast %54 : vector<8x8x128xbf16> to vector<64x128xbf16>
    %c0_52 = arith.constant 0 : index
    %c0_53 = arith.constant 0 : index
    %56 = vector.load %arg4[%c0_52, %c0_53] : memref<128x128xbf16, #tpu.memory_space<vmem>>, vector<128x128xbf16>
    %cst_54 = arith.constant dense<0.000000e+00> : vector<64x128xf32>
    %57 = tpu.matmul %55, %56, %cst_54 {dimension_numbers = #tpu.dot_dimension_numbers<[1], [0], [0], [1], [0, 0, 1, 1], [], []>} : vector<64x128xbf16>, vector<128x128xbf16>, vector<64x128xf32> -> vector<64x128xf32>
    %c0_55 = arith.constant 0 : index
    %c0_56 = arith.constant 0 : index
    %58 = vector.load %arg8[%c0_55, %c0_56] : memref<64x128xf32, #tpu.memory_space<vmem>>, vector<64x128xf32>
    tpu.vector_store %arg8[%c0_55, %c0_56], %57 {strides = array<i32>} : memref<64x128xf32, #tpu.memory_space<vmem>>, vector<64x128xf32>,
    %cst_57 = arith.constant dense<0.000000e+00> : vector<128xf32>
    %59 = vector.multi_reduction <add>, %57, %cst_57 [0] : vector<64x128xf32> to vector<128xf32>
    %60 = vector.shape_cast %59 : vector<128xf32> to vector<1x128xf32>
    %61 = vector.shape_cast %60 : vector<1x128xf32> to vector<1x128xf32>
    %62 = vector.broadcast %61 : vector<1x128xf32> to vector<8x128xf32>
    %c0_58 = arith.constant 0 : index
    %c0_59 = arith.constant 0 : index
    %63 = vector.load %arg9[%c0_58, %c0_59] : memref<8x128xf32, #tpu.memory_space<vmem>>, vector<8x128xf32>
    tpu.vector_store %arg9[%c0_58, %c0_59], %62 {strides = array<i32>} : memref<8x128xf32, #tpu.memory_space<vmem>>, vector<8x128xf32>,
    %64 = arith.mulf %57, %57 : vector<64x128xf32>
    %cst_60 = arith.constant dense<0.000000e+00> : vector<128xf32>
    %65 = vector.multi_reduction <add>, %64, %cst_60 [0] : vector<64x128xf32> to vector<128xf32>
    %66 = vector.shape_cast %65 : vector<128xf32> to vector<1x128xf32>
    %67 = vector.shape_cast %66 : vector<1x128xf32> to vector<1x128xf32>
    %68 = vector.broadcast %67 : vector<1x128xf32> to vector<8x128xf32>
    %c0_61 = arith.constant 0 : index
    %c0_62 = arith.constant 0 : index
    %69 = vector.load %arg10[%c0_61, %c0_62] : memref<8x128xf32, #tpu.memory_space<vmem>>, vector<8x128xf32>
    tpu.vector_store %arg10[%c0_61, %c0_62], %68 {strides = array<i32>} : memref<8x128xf32, #tpu.memory_space<vmem>>, vector<8x128xf32>,
    return
  }
  func.func @transform_0(%arg0: i32, %arg1: i32) -> (i32, i32, i32, i32) {
    %c0_i32 = arith.constant 0 : i32
    %c0_i32_0 = arith.constant 0 : i32
    %c0_i32_1 = arith.constant 0 : i32
    %c0_i32_2 = arith.constant 0 : i32
    return %arg0, %c0_i32, %c0_i32_0, %c0_i32_1 : i32, i32, i32, i32
  }
  func.func @transform_1(%arg0: i32, %arg1: i32) -> (i32, i32, i32) {
    %c0_i32 = arith.constant 0 : i32
    %c0_i32_0 = arith.constant 0 : i32
    %c0_i32_1 = arith.constant 0 : i32
    %c0_i32_2 = arith.constant 0 : i32
    return %c0_i32, %c0_i32_0, %c0_i32_1 : i32, i32, i32
  }
  func.func @transform_2(%arg0: i32, %arg1: i32) -> (i32, i32) {
    %c0_i32 = arith.constant 0 : i32
    %c0_i32_0 = arith.constant 0 : i32
    %c0_i32_1 = arith.constant 0 : i32
    return %c0_i32, %c0_i32_0 : i32, i32
  }
  func.func @transform_3(%arg0: i32, %arg1: i32) -> (i32, i32) {
    %c1_i32 = arith.constant 1 : i32
    %0 = arith.muli %arg0, %c1_i32 : i32
    %1 = arith.addi %0, %arg1 : i32
    %c0_i32 = arith.constant 0 : i32
    %c0_i32_0 = arith.constant 0 : i32
    return %1, %c0_i32 : i32, i32
  }
  func.func @transform_4(%arg0: i32, %arg1: i32) -> (i32, i32) {
    %c1_i32 = arith.constant 1 : i32
    %0 = arith.muli %arg0, %c1_i32 : i32
    %1 = arith.addi %0, %arg1 : i32
    %c0_i32 = arith.constant 0 : i32
    %c0_i32_0 = arith.constant 0 : i32
    return %1, %c0_i32 : i32, i32
  }
  func.func @transform_5(%arg0: i32, %arg1: i32) -> (i32, i32) {
    %c1_i32 = arith.constant 1 : i32
    %0 = arith.muli %arg0, %c1_i32 : i32
    %1 = arith.addi %0, %arg1 : i32
    %c0_i32 = arith.constant 0 : i32
    %c0_i32_0 = arith.constant 0 : i32
    return %1, %c0_i32 : i32, i32
  }
  func.func @transform_6(%arg0: i32, %arg1: i32) -> (i32, i32) {
    %c1_i32 = arith.constant 1 : i32
    %0 = arith.muli %arg0, %c1_i32 : i32
    %1 = arith.addi %0, %arg1 : i32
    %c0_i32 = arith.constant 0 : i32
    %c0_i32_0 = arith.constant 0 : i32
    return %1, %c0_i32 : i32, i32
  }
  func.func @transform_7(%arg0: i32, %arg1: i32) -> (i32, i32) {
    %c1_i32 = arith.constant 1 : i32
    %0 = arith.muli %arg0, %c1_i32 : i32
    %1 = arith.addi %0, %arg1 : i32
    %c0_i32 = arith.constant 0 : i32
    %c0_i32_0 = arith.constant 0 : i32
    return %1, %c0_i32 : i32, i32
  }
  func.func @transform_8(%arg0: i32, %arg1: i32) -> (i32, i32) {
    %c1_i32 = arith.constant 1 : i32
    %0 = arith.muli %arg0, %c1_i32 : i32
    %1 = arith.addi %0, %arg1 : i32
    %c0_i32 = arith.constant 0 : i32
    %c0_i32_0 = arith.constant 0 : i32
    return %1, %c0_i32 : i32, i32
  }
}

</mosaic_0001>

<bundles_post_ra>
// kernel: tpu_custom_call.1
= control target key start
LH: loop header
LB: loop body
LE: loop exit
PB: predicated region body
PF: predicated region fallthrough
CT: control target
= control target key end

     0   :  { %s4432_s0 = inlined_call_operand.vmem [shape: bf16[2,36,9,128], index: 0, kind: input, shape index: {}]   ;;  %s4433_s1 = inlined_call_operand.vmem [shape: bf16[3,384,128], index: 1, kind: input, shape index: {}]   ;;  %s4434_s2 = inlined_call_operand.vmem [shape: bf16[128,128], index: 2, kind: input, shape index: {}]   ;;  %s4435_s3 = inlined_call_operand.hbm [shape: f32[128,128], index: 3, kind: output, shape index: {0}]   ;;  %s4436_s4 = inlined_call_operand.hbm [shape: f32[16,128], index: 4, kind: output, shape index: {1}]   ;;  %s4437_s5 = inlined_call_operand.hbm [shape: f32[16,128], index: 5, kind: output, shape index: {2}]   ;;  %s4438_s6 = inlined_call_operand.hbm [shape: f32[128,128], index: 6, kind: output, shape index: {3}]   ;;  %s4439_s7 = inlined_call_operand.hbm [shape: f32[16,128], index: 7, kind: output, shape index: {4}]   ;;  %s4440_s8 = inlined_call_operand.hbm [shape: f32[16,128], index: 8, kind: output, shape index: {5}]  }
   0x1   :  { %4449 = sst [smem:[#allocation17_spill]] %s4432_s0 }
   0x2   :  { %4450 = sst [smem:[#allocation18_spill]] %s4433_s1 }
   0x3   :  { %4451 = sst [smem:[#allocation19_spill]] %s4434_s2 }
   0x4   :  { %4452 = sst [smem:[#allocation20_spill]] %s4435_s3 }
   0x5   :  { %14 = vsyncpa [#allocation3], 0 }
   0x6   :  { %16 = vsyncpa [#allocation3 + $0x1], 0 }
   0x7   :  { %17 = vsyncpa [#allocation5], 0 }
   0x8   :  { %19 = vsyncpa [#allocation5 + $0x1], 0 }
   0x9   :  { %20 = vsyncpa [#allocation8], 0 }
   0xa   :  { %22 = vsyncpa [#allocation8 + $0x1], 0 }
   0xb   :  { %23 = vsyncpa [#allocation11], 0 }
   0xc   :  { %25 = vsyncpa [#allocation11 + $0x1], 0  ;;  %s3664_s27 = smov 0   ;;  %s3666_s28 = smov 0  }
   0xd   :  { %s3668_s29 = smov 0   ;;  %s3670_s30 = smov 0  }
   0xe   :  { %s3672_s9 = smov 0   ;;  %s3674_s10 = smov 0  }
   0xf LB: > { %s4442_s11 = sadd.s32 4294967295, %s3609_s10   ;;  %s4441_s12 = sadd.s32 4294967294, %s3609_s10   ;;  %s3609_s10 = sphi %s3674_s10, %s31_s10   ;;  %s3605_s9 = sphi %s3672_s9, %s4477_s9   ;;  %s3601_s30 = sphi %s3670_s30, %s4476_s30   ;;  %s3597_s29 = sphi %s3668_s29, %s4475_s29   ;;  %s3593_s28 = sphi %s3666_s28, %s4474_s28   ;;  %s3589_s27 = sphi %s3664_s27, %s4473_s27  }
  0x10   : > { %s43_s13 = sadd.s32 1, %s3605_s9  ;;  %s120_s14 = sadd.s32 1, %s3597_s29 }
  0x11   : > { %p45_p0 = scmp.ge.s32.totalorder %s43_s13, 2  ;;  %p130_p1 = scmp.ne.s32.totalorder %s3597_s29, %s3593_s28 }
  0x12   : > { %p131_p2 = scmp.eq.s32.totalorder %s4442_s11, 1  ;;  %p136_p3 = scmp.ne.s32.totalorder %s3593_s28, %s3589_s27 }
  0x13   : > { %s4479_s13 = smov (%p45_p0, %s43_s13), 0  ;;  %p137_p5 = scmp.eq.s32.totalorder %s4441_s12, 1 }
  0x14   : > { %4453 = sst [smem:[#allocation16_spill]] %s4479_s13  ;;  %p3706_p4 = por %p131_p2, %p130_p1 }
  0x15   : > { %s117_s16 = ssub.s32 %s3605_s9, %s4479_s13  ;;  %p2562_p6 = scmp.ge.s32.totalorder %s3609_s10, 1 }
  0x16   : > { %p118_p7 = scmp.eq.s32.totalorder %s117_s16, 0  ;;  %p3715_p8 = por %p137_p5, %p136_p3 }
  0x17   : > { %p309_p9 = scmp.lt.s32.totalorder %s3609_s10, 3 }
  0x18   : > { %s3721_s18 = scalar_select %p118_p7, %s3597_s29, %s120_s14  }
  0x19   : > { %p310_p10 = pnand %p2562_p6, %p309_p9 }
  0x1a   : > { %s4456_s1 = sld [smem:[#allocation18_spill]] (!%p310_p10)  ;;  %p368_p11 = scmp.lt.s32.totalorder (!%p310_p10), %s3601_s30, 1  ;;  %vm407_vm0 = vsmask.f32 (!%p310_p10), 3328  ;;  %vm408_vm1 = vsmask.f32 (!%p310_p10), 7440 }
  0x1b   : > { %313 = sbr.rel (%p310_p10) target bundleno = 516 (0x204), region = 32  ;;  %s4457_s0 = sld [smem:[#allocation17_spill]] (!%p310_p10)  ;;  %vm3821_vm2 = vmor (!%p310_p10), %vm407_vm0, %vm408_vm1 }
  0x1c   : > { %s4460_s2 = sld [smem:[#allocation19_spill]] (!%p310_p10)  ;;  %s4461_s3 = sld [smem:[#allocation20_spill]] (!%p310_p10) }
  0x1d   : > { %s3611_s20 = smov (!%p310_p10), [#allocation2]  }
  0x20   : > { %v3271_v0 = vld [vmem:[%s4456_s1 + $0x100] sm:$0xff] (!%p310_p10)   ;;  %v3274_v3 = vld [vmem:[%s4456_s1 + $0x108] sm:$0xff] (!%p310_p10)   ;;  %v3277_v6 = vld [vmem:[%s4456_s1 + $0x110] sm:$0xff] (!%p310_p10)  }
  0x21   : > { %v3272_v1 = vld [vmem:[%s4456_s1 + $0x140] sm:$0xff] (!%p310_p10)   ;;  %2868 = vmatprep.subr.bf16.mxu0 (!%p310_p10), %v3271_v0  ;;  %v3275_v4 = vld [vmem:[%s4456_s1 + $0x148] sm:$0xff] (!%p310_p10)   ;;  %v3278_v7 = vld [vmem:[%s4456_s1 + $0x150] sm:$0xff] (!%p310_p10)  }
  0x22   : > { %v3273_v2 = vld [vmem:[%s4456_s1 + $0xc0] sm:$0xff]   ;;  %3036 = vmatprep.subr.bf16.mxu1 %v3272_v1  ;;  %v3276_v5 = vld [vmem:[%s4456_s1 + $0xc8] sm:$0xff]   ;;  %v3279_v8 = vld [vmem:[%s4456_s1 + $0xd0] sm:$0xff]   ;;  %s369_s14 = scalar_select %p368_p11, %s3601_s30, 1 }
  0x23   : > { %2869 = vmatpush3.bf16.msra.mxu0 %v3273_v2  ;;  %3037 = vmatpush3.bf16.msra.mxu1 %v3272_v1  ;;  %v3280_v9 = vld [vmem:[%s4456_s1 + $0x118] sm:$0xff]   ;;  %v3283_v12 = vld [vmem:[%s4456_s1 + $0x120] sm:$0xff]   ;;  %v3286_v15 = vld [vmem:[%s4456_s1 + $0x128] sm:$0xff]  }
  0x24   : > { %2870 = vmatprep.subr.bf16.mxu0 %v3274_v3  ;;  %3038 = vmatprep.subr.bf16.mxu1 %v3275_v4  ;;  %v3281_v10 = vld [vmem:[%s4456_s1 + $0x158] sm:$0xff]   ;;  %v3284_v13 = vld [vmem:[%s4456_s1 + $0x160] sm:$0xff]   ;;  %v3287_v16 = vld [vmem:[%s4456_s1 + $0x168] sm:$0xff]   ;;  %s3188_s24 = smul.u32 288, %s369_s14  ;;  %s4443_s14 = sshll.u32 %s3601_s30, 10 }
  0x25   : > { %v3282_v11 = vld [vmem:[%s4456_s1 + $0xd8] sm:$0xff]   ;;  %v3285_v14 = vld [vmem:[%s4456_s1 + $0xe0] sm:$0xff]   ;;  %v3288_v17 = vld [vmem:[%s4456_s1 + $0xe8] sm:$0xff]   ;;  %s4174_s19 = scalar_lea.hbm %s4461_s3, %s4443_s14 }
  0x26   : > { %v3289_v18 = vld [vmem:[%s4456_s1 + $0x130] sm:$0xff]   ;;  %s3791_s25 = scalar_lea.vmem %s4457_s0, %s3188_s24  ;;  %v3292_v21 = vld [vmem:[%s4456_s1 + $0x138] sm:$0xff]   ;;  %v3297_v35 = vld [vmem:[%s4456_s1 + $0x40] sm:$0xff]  }
  0x27   : > { %2871 = vmatpush3.bf16.msra.mxu0 %v3276_v5  ;;  %3039 = vmatpush3.bf16.msra.mxu1 %v3275_v4  ;;  %v3290_v19 = vld [vmem:[%s4456_s1 + $0x170] sm:$0xff]   ;;  %v3293_v22 = vld [vmem:[%s4456_s1 + $0x178] sm:$0xff]   ;;  %v3813_v36 = vld [vmem:[%s4456_s1 + $0x80] sm:$0xff]  }
  0x28   : > { %2872 = vmatprep.subr.bf16.mxu0 %v3277_v6  ;;  %3040 = vmatprep.subr.bf16.mxu1 %v3278_v7  ;;  %v3291_v20 = vld [vmem:[%s4456_s1 + $0xf0] sm:$0xff]   ;;  %v3295_v23 = vld [vmem:[%s3791_s25 + $0xd8] ss:$8 sps:$4 sm:$0xff]   ;;  %v2607_v28 = vld [vmem:[%s3791_s25 + $0x9c] sm:$0x1] }
  0x29   : > { %v2590_v24 = vld [vmem:[%s3791_s25 + $0x90] sm:$0xf]  ;;  %v2591_v25 = vld [vmem:[%s3791_s25 + $0x98] sm:$0xf]  ;;  %1061 = vmatprep.mubr.bf16.mxu0 %v3295_v23  ;;  %v2606_v27 = vld [vmem:[%s3791_s25 + $0x94] sm:$0x1] }
  0x2a   : > { %v3294_v26 = vld [vmem:[%s4456_s1 + $0xf8] sm:$0xff]   ;;  %v661_v29 = vshrl.u32 %v2590_v24, 16  ;;  %v664_v30 = vshll.u32 %v2590_v24, 16  ;;  %v670_v31 = vshll.u32 %v2606_v27, 16  ;;  %v675_v32 = vshrl.u32 %v2591_v25, 16  ;;  %v3299_v54 = vld [vmem:[%s4456_s1] sm:$0xff]  }
  0x2b   : > { %2873 = vmatpush3.bf16.msra.mxu0 %v3279_v8  ;;  %3041 = vmatpush3.bf16.msra.mxu1 %v3278_v7  ;;  %v678_v33 = vshll.u32 %v2591_v25, 16  ;;  %v684_v34 = vshll.u32 %v2607_v28, 16  ;;  %v2592_v43 = vld [vmem:[%s3791_s25 + $0xa0] sm:$0xf]  ;;  %v2614_v44 = vcombine.low %v2590_v24, %v2591_v25  ;;  %v2593_v46 = vld [vmem:[%s3791_s25 + $0xa8] sm:$0xf] }
  0x2c   : > { %2874 = vmatprep.subr.bf16.mxu0 %v3280_v9  ;;  %3042 = vmatprep.subr.bf16.mxu1 %v3281_v10  ;;  %v663_v37 = vrot.slane %v661_v29, 4  ;;  %v666_v38 = vrot.slane %v664_v30, 5  ;;  %v672_v39 = vrot.slane %v670_v31, 5  ;;  %v677_v40 = vrot.slane %v675_v32, 4  ;;  %v2608_v47 = vld [vmem:[%s3791_s25 + $0xa4] sm:$0x1] }
  0x2d   : > { %v680_v41 = vrot.slane %v678_v33, 5  ;;  %v686_v42 = vrot.slane %v684_v34, 5  ;;  %v2609_v48 = vld [vmem:[%s3791_s25 + $0xac] sm:$0x1]  ;;  %v689_v51 = vshrl.u32 %v2592_v43, 16  ;;  %v692_v52 = vshll.u32 %v2592_v43, 16 }
  0x2e   : > { %v667_v45 = vor.u32 %v666_v38, %v663_v37  ;;  %v698_v53 = vshll.u32 %v2608_v47, 16  ;;  %v703_v56 = vshrl.u32 %v2593_v46, 16  ;;  %v706_v57 = vshll.u32 %v2593_v46, 16  ;;  %v3300_v1 = vld [vmem:[%s4456_s1 + $0x48] sm:$0xff]   ;;  %v2594_v23 = vld [vmem:[%s3791_s25 + $0xb0] sm:$0xf] }
  0x2f   : > { %2875 = vmatpush3.bf16.msra.mxu0 %v3282_v11  ;;  %3043 = vmatpush3.bf16.msra.mxu1 %v3281_v10  ;;  %v681_v50 = vor.u32 %v680_v41, %v677_v40  ;;  %v712_v58 = vshll.u32 %v2609_v48, 16  ;;  %v691_v60 = vrot.slane %v689_v51, 4  ;;  %v694_v61 = vrot.slane %v692_v52, 5  ;;  %v3302_v8 = vld [vmem:[%s4456_s1 + $0x8] sm:$0xff]   ;;  %v3305_v10 = vld [vmem:[%s4456_s1 + $0x50] sm:$0xff]   ;;  %v3313_v30 = vld [vmem:[%s4456_s1 + $0x60] sm:$0xff]  }
  0x30   : > { %2876 = vmatprep.subr.bf16.mxu0 %v3283_v12  ;;  %3044 = vmatprep.subr.bf16.mxu1 %v3284_v13  ;;  %v668_v55 = vrot.slane %v667_v45, 4  ;;  %v705_v63 = vrot.slane %v703_v56, 4  ;;  %v708_v0 = vrot.slane %v706_v57, 5  ;;  %v700_v4 = vrot.slane %v698_v53, 5  ;;  %v3303_v12 = vld [vmem:[%s3791_s25 + $0xe8] ss:$8 sps:$4 sm:$0xff]  }
  0x31   : > { %v682_v59 = vrot.slane %v681_v50, 4  ;;  %v695_v3 = vor.u32 %v694_v61, %v691_v60  ;;  %v714_v7 = vrot.slane %v712_v58, 5  ;;  %v2595_v24 = vld [vmem:[%s3791_s25 + $0xb8] sm:$0xf]  ;;  %v717_v25 = vshrl.u32 %v2594_v23, 16  ;;  %v3316_v37 = vld [vmem:[%s4456_s1 + $0x68] sm:$0xff]  }
  0x32   : > { %v673_v62 = vsel %vm3821_vm2, %v668_v55, %v672_v39  ;;  %v709_v6 = vor.u32 %v708_v0, %v705_v63  ;;  %v731_v27 = vshrl.u32 %v2595_v24, 16  ;;  %v734_v28 = vshll.u32 %v2595_v24, 16  ;;  %v3309_v31 = vld [vmem:[%s4456_s1 + $0x98] sm:$0xff]   ;;  %v3314_v39 = vld [vmem:[%s4456_s1 + $0xa0] sm:$0xff]   ;;  %v3318_v40 = vld [vmem:[%s4456_s1 + $0x28] sm:$0xff]  }
  0x33   : > { %2877 = vmatpush3.bf16.msra.mxu0 %v3285_v14  ;;  %3045 = vmatpush3.bf16.msra.mxu1 %v3284_v13  ;;  %v687_v2 = vsel %vm3821_vm2, %v682_v59, %v686_v42  ;;  %v696_v9 = vrot.slane %v695_v3, 4  ;;  %v2615_v13 = vcombine.low %v2592_v43, %v2593_v46  ;;  %v2616_v29 = vcombine.low %v2594_v23, %v2595_v24  ;;  %v3319_v43 = vld [vmem:[%s3791_s25 + $0x108] ss:$8 sps:$4 sm:$0xff]   ;;  %v2610_v48 = vld [vmem:[%s3791_s25 + $0xb4] sm:$0x1] }
  0x34   : > { %2878 = vmatprep.subr.bf16.mxu0 %v3286_v15  ;;  %3046 = vmatprep.subr.bf16.mxu1 %v3287_v16  ;;  %v2622_v5 = vcombine.low %v673_v62, %v687_v2  ;;  %v710_v11 = vrot.slane %v709_v6, 4  ;;  %v3301_v15 = vld [vmem:[%s4456_s1 + $0x88] sm:$0xff]   ;;  %v719_v32 = vrot.slane %v717_v25, 4  ;;  %v733_v34 = vrot.slane %v731_v27, 4  ;;  %v2611_v53 = vld [vmem:[%s3791_s25 + $0xbc] sm:$0x1] }
  0x35   : > { %v701_v14 = vsel %vm3821_vm2, %v696_v9, %v700_v4  ;;  %v2597_v45 = vld [vmem:[%s3791_s25 + $0xc8] sm:$0xf]  ;;  %v3321_v55 = vld [vmem:[%s4456_s1 + $0x70] sm:$0xff]   ;;  %v740_v59 = vshll.u32 %v2611_v53, 16  ;;  %v2612_v4 = vld [vmem:[%s3791_s25 + $0xc4] sm:$0x1] }
  0x36   : > { %3052 = vmatprep.mubr.bf16.mxu1 %v2622_v5  ;;  %v759_v50 = vshrl.u32 %v2597_v45, 16  ;;  %v762_v51 = vshll.u32 %v2597_v45, 16  ;;  %v3317_v60 = vld [vmem:[%s4456_s1 + $0xa8] sm:$0xff]   ;;  %v3323_v2 = vld [vmem:[%s4456_s1 + $0x30] sm:$0xff]   ;;  %v754_v9 = vshll.u32 %v2612_v4, 16 }
  0x37   : > { %2879 = vmatpush3.bf16.msra.mxu0 %v3288_v17  ;;  %3047 = vmatpush3.bf16.msra.mxu1 %v3287_v16  ;;  %v715_v16 = vsel %vm3821_vm2, %v710_v11, %v714_v7  ;;  %v3307_v17 = vld [vmem:[%s4456_s1 + $0x10] sm:$0xff]   ;;  %v742_v0 = vrot.slane %v740_v59, 5  ;;  %v2613_v5 = vld [vmem:[%s3791_s25 + $0xcc] sm:$0x1]  ;;  %v3324_v11 = vld [vmem:[%s4456_s1 + $0x78] sm:$0xff]  }
  0x38   : > { %2880 = vmatprep.subr.bf16.mxu0 %v3289_v18  ;;  %3048 = vmatprep.subr.bf16.mxu1 %v3290_v19  ;;  %v2623_v18 = vcombine.low %v701_v14, %v715_v16  ;;  %v761_v61 = vrot.slane %v759_v50, 4  ;;  %v764_v62 = vrot.slane %v762_v51, 5  ;;  %v383_v24 = vld [vmem:[%s3791_s25 + $0x8] sm:$0xf]  ;;  %v399_v25 = vld [vmem:[%s3791_s25 + $0x4] sm:$0x1] }
  0x39   : > { %v400_v27 = vld [vmem:[%s3791_s25 + $0xc] sm:$0x1]  ;;  %v402_v50 = vld [vmem:[%s3791_s25 + $0x1c] sm:$0x1]  ;;  %v3377_v49 = vld [vmem:[%s3791_s25 + $0xf8] ss:$8 sps:$4 sm:$0xff]  }
  0x3a   : > { %v765_v6 = vor.u32 %v764_v62, %v761_v61  ;;  %v3334_v4 = vld [vmem:[%s4456_s1 + $0x188] sm:$0xff]  }
  0x3b   : > { %2881 = vmatpush3.bf16.msra.mxu0 %v3291_v20  ;;  %3049 = vmatpush3.bf16.msra.mxu1 %v3290_v19  ;;  %v3308_v19 = vld [vmem:[%s4456_s1 + $0x58] sm:$0xff]   ;;  %v3306_v20 = vld [vmem:[%s4456_s1 + $0x90] sm:$0xff]  }
  0x3c   : > { %2882 = vmatprep.subr.bf16.mxu0 %v3292_v21  ;;  %3050 = vmatprep.subr.bf16.mxu1 %v3293_v22  ;;  %v3310_v21 = vld [vmem:[%s4456_s1 + $0x18] sm:$0xff]   ;;  %v766_v14 = vrot.slane %v765_v6, 4 }
  0x3f   : > { %2883 = vmatpush3.bf16.msra.mxu0 %v3294_v26  ;;  %3051 = vmatpush3.bf16.msra.mxu1 %v3293_v22  ;;  %v3311_v22 = vld [vmem:[%s3791_s25 + $0xf8] ss:$8 sps:$4 sm:$0xff]   ;;  %v720_v26 = vshll.u32 %v2594_v23, 16 }
  0x40   : > { %2920 = vmatprep.subr.bf16.mxu0 %v3297_v35  ;;  %3060 = vmatprep.subr.bf16.mxu1 %v3813_v36  ;;  %v736_v35 = vrot.slane %v734_v28, 5  ;;  %v382_v23 = vld [vmem:[%s3791_s25] sm:$0xf] }
  0x41   : > { %v722_v33 = vrot.slane %v720_v26, 5  ;;  %v2578_v26 = vcombine.low %v382_v23, %v383_v24  ;;  %v411_v28 = vshrl.u32 %v382_v23, 16 }
  0x42   : > { %1062 = vmatmul.mubr.bf16.vlgmr.msra.gmra.mrb[0].mxu0 %v2614_v44  ;;  %3053 = vmatmul.mubr.bf16.vlgmr.msra.gmra.mrb[0].mxu1 %v2623_v18  ;;  %v737_v42 = vor.u32 %v736_v35, %v733_v34  ;;  %v2596_v44 = vld [vmem:[%s3791_s25 + $0xc0] sm:$0xf]  ;;  %v3326_v18 = vld [vmem:[%s4456_s1 + $0x38] sm:$0xff]   ;;  %v434_v34 = vshll.u32 %v400_v27, 16 }
  0x43   : > { %2921 = vmatpush3.bf16.msra.mxu0 %v3299_v54  ;;  %1069 = vmatprep.mubr.bf16.mxu0 %v3303_v12  ;;  %v723_v38 = vor.u32 %v722_v33, %v719_v32  ;;  %v745_v46 = vshrl.u32 %v2596_v44, 16  ;;  %v748_v47 = vshll.u32 %v2596_v44, 16  ;;  %v2617_v52 = vcombine.low %v2596_v44, %v2597_v45  ;;  %v3931_v35 = vld [vmem:[%s4456_s1 + $0x200] sm:$0xff]   ;;  %v384_v45 = vld [vmem:[%s3791_s25 + $0x10] sm:$0xf] }
  0x44   : > { %2922 = vmatprep.subr.bf16.mxu0 %v3300_v1  ;;  %3061 = vmatpush3.bf16.msra.mxu1 %v3813_v36  ;;  %v3315_v36 = vld [vmem:[%s4456_s1 + $0x20] sm:$0xff]   ;;  %v726_v54 = vshll.u32 %v2610_v48, 16  ;;  %v738_v58 = vrot.slane %v737_v42, 4  ;;  %v425_v32 = vshrl.u32 %v383_v24, 16  ;;  %v428_v33 = vshll.u32 %v383_v24, 16 }
  0x45   : > { %3062 = vmatprep.subr.bf16.mxu1 %v3301_v15  ;;  %v724_v41 = vrot.slane %v723_v38, 4  ;;  %v747_v56 = vrot.slane %v745_v46, 4  ;;  %v750_v57 = vrot.slane %v748_v47, 5  ;;  %v436_v42 = vrot.slane %v434_v34, 5  ;;  %v385_v46 = vld [vmem:[%s3791_s25 + $0x18] sm:$0xf] }
  0x46   : > { %v728_v63 = vrot.slane %v726_v54, 5  ;;  %v743_v7 = vsel %vm3821_vm2, %v738_v58, %v742_v0  ;;  %v401_v48 = vld [vmem:[%s3791_s25 + $0x14] sm:$0x1]  ;;  %v439_v51 = vshrl.u32 %v384_v45, 16  ;;  %v3347_v34 = vld [vmem:[%s4456_s1 + $0x1a0] sm:$0xff]  }
  0x47   : > { %2923 = vmatpush3.bf16.msra.mxu0 %v3302_v8  ;;  %v751_v1 = vor.u32 %v750_v57, %v747_v56  ;;  %v448_v54 = vshll.u32 %v401_v48, 16  ;;  %v456_v56 = vshll.u32 %v385_v46, 16  ;;  %v389_v48 = vld [vmem:[%s3791_s25 + $0x38] sm:$0xf] }
  0x48   : > { %2924 = vmatprep.subr.bf16.mxu0 %v3305_v10  ;;  %3063 = vmatpush3.bf16.msra.mxu1 %v3301_v15  ;;  %v729_v3 = vsel %vm3821_vm2, %v724_v41, %v728_v63  ;;  %v768_v10 = vshll.u32 %v2613_v5, 16  ;;  %v756_v15 = vrot.slane %v754_v9, 5  ;;  %v430_v41 = vrot.slane %v428_v33, 5  ;;  %v3337_v9 = vld [vmem:[%s4456_s1 + $0x1d0] sm:$0xff]  }
  0x49   : > { %3064 = vmatprep.subr.bf16.mxu1 %v3306_v20  ;;  %v752_v8 = vrot.slane %v751_v1, 4  ;;  %v2624_v12 = vcombine.low %v729_v3, %v743_v7  ;;  %v441_v58 = vrot.slane %v439_v51, 4  ;;  %v450_v62 = vrot.slane %v448_v54, 5 }
  0x4a   : > { %1070 = vmatmul.mubr.bf16.gmra.mrb[4].mxu0 %v2615_v13  ;;  %v3322_v13 = vld [vmem:[%s4456_s1 + $0xb0] sm:$0xff]   ;;  %v770_v16 = vrot.slane %v768_v10, 5  ;;  %v458_v0 = vrot.slane %v456_v56, 5  ;;  %v512_v56 = vshll.u32 %v389_v48, 16 }
  0x4b   : > { %2925 = vmatpush3.bf16.msra.mxu0 %v3307_v17  ;;  %1077 = vmatprep.mubr.bf16.mxu0 %v3311_v22  ;;  %v3325_v17 = vld [vmem:[%s4456_s1 + $0xb8] sm:$0xff]  }
  0x4c   : > { %2926 = vmatprep.subr.bf16.mxu0 %v3308_v19  ;;  %3065 = vmatpush3.bf16.msra.mxu1 %v3306_v20  ;;  %v757_v19 = vsel %vm3821_vm2, %v752_v8, %v756_v15  ;;  %v771_v20 = vsel %vm3821_vm2, %v766_v14, %v770_v16  ;;  %v2579_v8 = vcombine.low %v384_v45, %v385_v46  ;;  %v3339_v15 = vld [vmem:[%s4456_s1 + $0x190] sm:$0xff]  }
  0x4d   : > { %3066 = vmatprep.subr.bf16.mxu1 %v3309_v31  ;;  %3056 = vmatprep.mubr.bf16.mxu1 %v2624_v12  ;;  %v2625_v22 = vcombine.low %v757_v19, %v771_v20  ;;  %v3342_v19 = vld [vmem:[%s4456_s1 + $0x198] sm:$0xff]   ;;  %v3343_v20 = vld [vmem:[%s3791_s25 + $0x68] ss:$8 sps:$4 sm:$0xff]  }
  0x4f   : > { %2927 = vmatpush3.bf16.msra.mxu0 %v3310_v21  ;;  %v3327_v21 = vld [vmem:[%s3791_s25 + $0x48] ss:$8 sps:$4 sm:$0xff]   ;;  %3057 = vmatmul.mubr.bf16.gmra.mrb[4].mxu1 %v2625_v22 }
  0x50   : > { %2928 = vmatprep.subr.bf16.mxu0 %v3313_v30  ;;  %3067 = vmatpush3.bf16.msra.mxu1 %v3309_v31  ;;  %v420_v30 = vshll.u32 %v399_v25, 16  ;;  %v3329_v31 = vld [vmem:[%s4456_s1 + $0x1c0] sm:$0xff]   ;;  %v387_v22 = vld [vmem:[%s3791_s25 + $0x28] sm:$0xf] }
  0x51   : > { %3068 = vmatprep.subr.bf16.mxu1 %v3314_v39  ;;  %v481_v25 = vshrl.u32 %v387_v22, 16 }
  0x52   : > { %1078 = vmatmul.mubr.bf16.gmra.mrb[8].mxu0 %v2616_v29  ;;  %v414_v29 = vshll.u32 %v382_v23, 16  ;;  %v422_v38 = vrot.slane %v420_v30, 5 }
  0x53   : > { %2929 = vmatpush3.bf16.msra.mxu0 %v3315_v36  ;;  %1085 = vmatprep.mubr.bf16.mxu0 %v3319_v43  ;;  %v413_v36 = vrot.slane %v411_v28, 4  ;;  %v3332_v43 = vld [vmem:[%s4456_s1 + $0x1c8] sm:$0xff]   ;;  %v3345_v28 = vld [vmem:[%s4456_s1 + $0x1e0] sm:$0xff]  }
  0x54   : > { %2930 = vmatprep.subr.bf16.mxu0 %v3316_v37  ;;  %3069 = vmatpush3.bf16.msra.mxu1 %v3314_v39  ;;  %v416_v37 = vrot.slane %v414_v29, 5  ;;  %v3331_v39 = vld [vmem:[%s4456_s1 + $0x180] sm:$0xff]   ;;  %v3341_v29 = vld [vmem:[%s4456_s1 + $0x218] sm:$0xff]  }
  0x55   : > { %3070 = vmatprep.subr.bf16.mxu1 %v3317_v60 }
  0x56   : > { %v417_v44 = vor.u32 %v416_v37, %v413_v36 }
  0x57   : > { %2931 = vmatpush3.bf16.msra.mxu0 %v3318_v40  ;;  %v427_v40 = vrot.slane %v425_v32, 4  ;;  %v483_v32 = vrot.slane %v481_v25, 4  ;;  %v2739_v25 = vld [vmem:[%s3791_s25 + $0x14] sm:$0x1] }
  0x58   : > { %2932 = vmatprep.subr.bf16.mxu0 %v3321_v55  ;;  %3071 = vmatpush3.bf16.msra.mxu1 %v3317_v60  ;;  %v418_v53 = vrot.slane %v417_v44, 4  ;;  %v453_v55 = vshrl.u32 %v385_v46, 16  ;;  %v462_v60 = vshll.u32 %v402_v50, 16  ;;  %v388_v46 = vld [vmem:[%s3791_s25 + $0x30] sm:$0xf] }
  0x59   : > { %3072 = vmatprep.subr.bf16.mxu1 %v3322_v13  ;;  %v431_v47 = vor.u32 %v430_v41, %v427_v40  ;;  %v3351_v41 = vld [vmem:[%s3791_s25 + $0x78] ss:$8 sps:$4 sm:$0xff]   ;;  %v495_v50 = vshrl.u32 %v388_v46, 16  ;;  %v498_v51 = vshll.u32 %v388_v46, 16 }
  0x5a   : > { %1086 = vmatmul.mubr.bf16.gmra.mrb[12].mxu0 %v2617_v52  ;;  %v442_v52 = vshll.u32 %v384_v45, 16  ;;  %v423_v61 = vsel %vm3821_vm2, %v418_v53, %v422_v38  ;;  %v455_v63 = vrot.slane %v453_v55, 4  ;;  %v464_v3 = vrot.slane %v462_v60, 5  ;;  %v3346_v38 = vld [vmem:[%s4456_s1 + $0x220] sm:$0xff]   ;;  %v3349_v53 = vld [vmem:[%s4456_s1 + $0x228] sm:$0xff]  }
  0x5b   : > { %2933 = vmatpush3.bf16.msra.mxu0 %v3323_v2  ;;  %1335 = vmatprep.mubr.bf16.mxu0 %v3327_v21  ;;  %v432_v57 = vrot.slane %v431_v47, 4  ;;  %v386_v21 = vld [vmem:[%s3791_s25 + $0x20] sm:$0xf]  ;;  %v509_v55 = vshrl.u32 %v389_v48, 16  ;;  %v497_v60 = vrot.slane %v495_v50, 4  ;;  %v4051_v50 = vld [vmem:[%s4460_s2 + $0x8] sm:$0xff]  }
  0x5c   : > { %2934 = vmatprep.subr.bf16.mxu0 %v3324_v11  ;;  %3073 = vmatpush3.bf16.msra.mxu1 %v3322_v13  ;;  %v444_v59 = vrot.slane %v442_v52, 5  ;;  %v459_v6 = vor.u32 %v458_v0, %v455_v63  ;;  %v3335_v11 = vld [vmem:[%s3791_s25 + $0x58] ss:$8 sps:$4 sm:$0xff]   ;;  %v3333_v13 = vld [vmem:[%s4456_s1 + $0x208] sm:$0xff]   ;;  %v467_v23 = vshrl.u32 %v386_v21, 16  ;;  %v470_v24 = vshll.u32 %v386_v21, 16 }
  0x5d   : > { %3074 = vmatprep.subr.bf16.mxu1 %v3325_v17  ;;  %v437_v1 = vsel %vm3821_vm2, %v432_v57, %v436_v42  ;;  %v2580_v27 = vcombine.low %v386_v21, %v387_v22  ;;  %v403_v42 = vld [vmem:[%s3791_s25 + $0x24] sm:$0x1]  ;;  %v3353_v52 = vld [vmem:[%s4456_s1 + $0x1f0] sm:$0xff]   ;;  %v2581_v57 = vcombine.low %v388_v46, %v389_v48 }
  0x5e   : > { %v445_v2 = vor.u32 %v444_v59, %v441_v58  ;;  %v2586_v5 = vcombine.low %v423_v61, %v437_v1  ;;  %v460_v10 = vrot.slane %v459_v6, 4  ;;  %v469_v30 = vrot.slane %v467_v23, 4  ;;  %v405_v58 = vld [vmem:[%s3791_s25 + $0x34] sm:$0x1]  ;;  %v2723_v23 = vld [vmem:[%s3791_s25 + $0x10] sm:$0xf] }
  0x5f   : > { %2935 = vmatpush3.bf16.msra.mxu0 %v3326_v18  ;;  %v3338_v18 = vld [vmem:[%s4456_s1 + $0x210] sm:$0xff]   ;;  %v476_v44 = vshll.u32 %v403_v42, 16  ;;  %v500_v61 = vrot.slane %v498_v51, 5  ;;  %v504_v63 = vshll.u32 %v405_v58, 16  ;;  %v511_v1 = vrot.slane %v509_v55, 4 }
  0x60   : > { %2972 = vmatprep.subr.bf16.mxu0 %v3329_v31  ;;  %3075 = vmatpush3.bf16.msra.mxu1 %v3325_v17  ;;  %v446_v7 = vrot.slane %v445_v2, 4  ;;  %v465_v14 = vsel %vm3821_vm2, %v460_v10, %v464_v3  ;;  %v3340_v17 = vld [vmem:[%s4456_s1 + $0x1d8] sm:$0xff]   ;;  %v472_v31 = vrot.slane %v470_v24, 5  ;;  %v514_v2 = vrot.slane %v512_v56, 5  ;;  %v2738_v24 = vld [vmem:[%s3791_s25 + $0xc] sm:$0x1] }
  0x61   : > { %3084 = vmatprep.subr.bf16.mxu1 %v3931_v35  ;;  %3076 = vmatprep.mubr.bf16.mxu1 %v2586_v5  ;;  %v478_v54 = vrot.slane %v476_v44, 5  ;;  %v501_v6 = vor.u32 %v500_v61, %v497_v60  ;;  %v2741_v42 = vld [vmem:[%s3791_s25 + $0x24] sm:$0x1]  ;;  %v4056_v55 = vld [vmem:[%s4460_s2 + $0x10] sm:$0xff]  }
  0x62   : > { %1336 = vmatmul.mubr.bf16.vlgmr.msra.gmra.mrb[16].mxu0 %v2578_v26  ;;  %v451_v12 = vsel %vm3821_vm2, %v446_v7, %v450_v62  ;;  %v484_v26 = vshll.u32 %v387_v22, 16  ;;  %v473_v36 = vor.u32 %v472_v31, %v469_v30  ;;  %v406_v62 = vld [vmem:[%s3791_s25 + $0x3c] sm:$0x1]  ;;  %v506_v7 = vrot.slane %v504_v63, 5  ;;  %v2722_v22 = vld [vmem:[%s3791_s25 + $0x8] sm:$0xf] }
  0x63   : > { %2973 = vmatpush3.bf16.msra.mxu0 %v3331_v39  ;;  %1343 = vmatprep.mubr.bf16.mxu0 %v3335_v11  ;;  %v2587_v16 = vcombine.low %v451_v12, %v465_v14  ;;  %v3350_v39 = vld [vmem:[%s4456_s1 + $0x1a8] sm:$0xff]   ;;  %v518_v3 = vshll.u32 %v406_v62, 16  ;;  %v515_v10 = vor.u32 %v514_v2, %v511_v1  ;;  %v3354_v12 = vld [vmem:[%s4456_s1 + $0x230] sm:$0xff]   ;;  %v3358_v14 = vld [vmem:[%s4456_s1 + $0x1b8] sm:$0xff]   ;;  %v1477_v30 = vshll.u32 %v2723_v23, 16 }
  0x64   : > { %2974 = vmatprep.subr.bf16.mxu0 %v3332_v43  ;;  %v486_v33 = vrot.slane %v484_v26, 5  ;;  %v474_v40 = vrot.slane %v473_v36, 4  ;;  %v404_v43 = vld [vmem:[%s3791_s25 + $0x2c] sm:$0x1]  ;;  %v1460_v26 = vshrl.u32 %v2722_v22, 16  ;;  %v1483_v31 = vshll.u32 %v2739_v25, 16 }
  0x65   : > { %3077 = vmatmul.mubr.bf16.vlgmr.msra.gmra.mrb[0].mxu1 %v2587_v16  ;;  %v490_v47 = vshll.u32 %v404_v43, 16  ;;  %v520_v11 = vrot.slane %v518_v3, 5  ;;  %v4028_v16 = vld [vmem:[%s4460_s2] sm:$0xff]   ;;  %v4065_v3 = vld [vmem:[%s3791_s25 + $0x28] sm:$0xf] }
  0x66   : > { %3085 = vmatpush3.bf16.msra.mxu1 %v3931_v35  ;;  %v3348_v35 = vld [vmem:[%s4456_s1 + $0x1e8] sm:$0xff]   ;;  %v487_v37 = vor.u32 %v486_v33, %v483_v32  ;;  %v479_v0 = vsel %vm3821_vm2, %v474_v40, %v478_v54  ;;  %v2746_v32 = vcombine.low %v2722_v22, %v2723_v23  ;;  %v2724_v33 = vld [vmem:[%s3791_s25 + $0x18] sm:$0xf]  ;;  %v1479_v40 = vrot.slane %v1477_v30, 5  ;;  %v4092_v25 = vld [vmem:[%s3791_s25 + $0x40] sm:$0xf] }
  0x67   : > { %2975 = vmatpush3.bf16.msra.mxu0 %v3334_v4  ;;  %3086 = vmatprep.subr.bf16.mxu1 %v3333_v13  ;;  %v492_v59 = vrot.slane %v490_v47, 5  ;;  %v3355_v4 = vld [vmem:[%s4456_s1 + $0x1b0] sm:$0xff]   ;;  %v1488_v43 = vshrl.u32 %v2724_v33, 16  ;;  %v1491_v44 = vshll.u32 %v2724_v33, 16  ;;  %v1511_v54 = vshll.u32 %v2741_v42, 16 }
  0x68   : > { %2976 = vmatprep.subr.bf16.mxu0 %v3337_v9  ;;  %v488_v45 = vrot.slane %v487_v37, 4  ;;  %v3363_v2 = vld [vmem:[%s3791_s25 + $0x60] ss:$8 sps:$4 sm:$0xff]   ;;  %v2744_v30 = vld [vmem:[%s3791_s25 + $0x3c] sm:$0x1] }
  0x69   : > { %v1513_v62 = vrot.slane %v1511_v54, 5 }
  0x6a   : > { %1344 = vmatmul.mubr.bf16.gmra.mrb[20].mxu0 %v2579_v8  ;;  %3087 = vmatpush3.bf16.msra.mxu1 %v3333_v13  ;;  %v493_v5 = vsel %vm3821_vm2, %v488_v45, %v492_v59  ;;  %v3356_v8 = vld [vmem:[%s4456_s1 + $0x1f8] sm:$0xff]   ;;  %v502_v13 = vrot.slane %v501_v6, 4  ;;  %v4070_v6 = vld [vmem:[%s3791_s25 + $0x30] sm:$0xf] }
  0x6b   : > { %2977 = vmatpush3.bf16.msra.mxu0 %v3339_v15  ;;  %1351 = vmatprep.mubr.bf16.mxu0 %v3343_v20  ;;  %v2588_v9 = vcombine.low %v479_v0, %v493_v5  ;;  %v516_v15 = vrot.slane %v515_v10, 4  ;;  %v3359_v20 = vld [vmem:[%s3791_s25 + $0x50] ss:$8 sps:$4 sm:$0xff]  }
  0x6c   : > { %2978 = vmatprep.subr.bf16.mxu0 %v3340_v17  ;;  %3088 = vmatprep.subr.bf16.mxu1 %v3338_v18  ;;  %v507_v17 = vsel %vm3821_vm2, %v502_v13, %v506_v7  ;;  %v2742_v7 = vld [vmem:[%s3791_s25 + $0x2c] sm:$0x1] }
  0x6d   : > { %3080 = vmatprep.mubr.bf16.mxu1 %v2588_v9  ;;  %v1525_v13 = vshll.u32 %v2742_v7, 16 }
  0x6e   : > { %3089 = vmatpush3.bf16.msra.mxu1 %v3338_v18  ;;  %v3357_v18 = vld [vmem:[%s4456_s1 + $0x238] sm:$0xff]  }
  0x6f   : > { %2979 = vmatpush3.bf16.msra.mxu0 %v3342_v19  ;;  %3090 = vmatprep.subr.bf16.mxu1 %v3341_v29  ;;  %v521_v19 = vsel %vm3821_vm2, %v516_v15, %v520_v11  ;;  %v2743_v11 = vld [vmem:[%s3791_s25 + $0x34] sm:$0x1] }
  0x70   : > { %2980 = vmatprep.subr.bf16.mxu0 %v3345_v28  ;;  %v2589_v21 = vcombine.low %v507_v17, %v521_v19  ;;  %v1469_v28 = vshll.u32 %v2738_v24, 16  ;;  %v1533_v19 = vshll.u32 %v4070_v6, 16  ;;  %v1539_v24 = vshll.u32 %v2743_v11, 16 }
  0x72   : > { %1352 = vmatmul.mubr.bf16.gmra.mrb[24].mxu0 %v2580_v27  ;;  %3091 = vmatpush3.bf16.msra.mxu1 %v3341_v29  ;;  %v1463_v27 = vshll.u32 %v2722_v22, 16  ;;  %v1474_v29 = vshrl.u32 %v2723_v23, 16  ;;  %v1471_v37 = vrot.slane %v1469_v28, 5  ;;  %v1527_v23 = vrot.slane %v1525_v13, 5 }
  0x73   : > { %2981 = vmatpush3.bf16.msra.mxu0 %v3347_v34  ;;  %1359 = vmatprep.mubr.bf16.mxu0 %v3351_v41  ;;  %v2725_v34 = vld [vmem:[%s3791_s25 + $0x20] sm:$0xf]  ;;  %v1485_v41 = vrot.slane %v1483_v31, 5  ;;  %v2745_v31 = vld [vmem:[%s3791_s25 + $0x44] sm:$0x1] }
  0x74   : > { %2982 = vmatprep.subr.bf16.mxu0 %v3348_v35  ;;  %3092 = vmatprep.subr.bf16.mxu1 %v3346_v38  ;;  %v1462_v35 = vrot.slane %v1460_v26, 4  ;;  %v1465_v36 = vrot.slane %v1463_v27, 5  ;;  %v1502_v47 = vshrl.u32 %v2725_v34, 16  ;;  %v1505_v48 = vshll.u32 %v2725_v34, 16  ;;  %v4098_v26 = vld [vmem:[%s4460_s2 + $0x20] sm:$0xff]  }
  0x75   : > { %3081 = vmatmul.mubr.bf16.gmra.mrb[4].mxu1 %v2589_v21  ;;  %v2747_v63 = vcombine.low %v2724_v33, %v2725_v34  ;;  %v1541_v33 = vrot.slane %v1539_v24, 5 }
  0x76   : > { %3093 = vmatpush3.bf16.msra.mxu1 %v3346_v38  ;;  %v1476_v38 = vrot.slane %v1474_v29, 4  ;;  %v1466_v45 = vor.u32 %v1465_v36, %v1462_v35  ;;  %v1504_v58 = vrot.slane %v1502_v47, 4  ;;  %v1507_v59 = vrot.slane %v1505_v48, 5 }
  0x77   : > { %2983 = vmatpush3.bf16.msra.mxu0 %v3350_v39  ;;  %3094 = vmatprep.subr.bf16.mxu1 %v3349_v53  ;;  %v2740_v39 = vld [vmem:[%s3791_s25 + $0x1c] sm:$0x1]  ;;  %v1535_v29 = vrot.slane %v1533_v19, 5  ;;  %v2748_v47 = vcombine.low %v4065_v3, %v4070_v6 }
  0x78   : > { %2984 = vmatprep.subr.bf16.mxu0 %v3353_v52  ;;  %v1497_v46 = vshll.u32 %v2740_v39, 16  ;;  %v1480_v51 = vor.u32 %v1479_v40, %v1476_v38  ;;  %v1490_v52 = vrot.slane %v1488_v43, 4  ;;  %v1467_v56 = vrot.slane %v1466_v45, 4 }
  0x79   : > { %v1508_v1 = vor.u32 %v1507_v59, %v1504_v58  ;;  %v1558_v38 = vshrl.u32 %v4092_v25, 16  ;;  %v1561_v39 = vshll.u32 %v4092_v25, 16  ;;  %v1567_v43 = vshll.u32 %v2745_v31, 16 }
  0x7a   : > { %1360 = vmatmul.mubr.bf16.gmra.mrb[28].mxu0 %v2581_v57  ;;  %3095 = vmatpush3.bf16.msra.mxu1 %v3349_v53  ;;  %v1493_v53 = vrot.slane %v1491_v44, 5  ;;  %v1499_v57 = vrot.slane %v1497_v46, 5  ;;  %v1481_v60 = vrot.slane %v1480_v51, 4  ;;  %v1472_v0 = vsel %vm3821_vm2, %v1467_v56, %v1471_v37 }
  0x7b   : > { %2985 = vmatpush3.bf16.msra.mxu0 %v3355_v4  ;;  %3096 = vmatprep.subr.bf16.mxu1 %v3354_v12  ;;  %v1509_v10 = vrot.slane %v1508_v1, 4  ;;  %v1553_v37 = vshll.u32 %v2744_v30, 16  ;;  %v1560_v45 = vrot.slane %v1558_v38, 4  ;;  %v1563_v46 = vrot.slane %v1561_v39, 5  ;;  %v3374_v1 = vld [vmem:[%s4460_s2 + $0x38] sm:$0xff]  }
  0x7c   : > { %2986 = vmatprep.subr.bf16.mxu0 %v3356_v8  ;;  %1860 = vmatprep.mubr.bf16.mxu0 %v3359_v20  ;;  %v1494_v61 = vor.u32 %v1493_v53, %v1490_v52  ;;  %v1486_v4 = vsel %vm3821_vm2, %v1481_v60, %v1485_v41  ;;  %v1516_v8 = vshrl.u32 %v4065_v3, 16  ;;  %v4087_v20 = vld [vmem:[%s3791_s25 + $0x38] sm:$0xf]  ;;  %v1569_v53 = vrot.slane %v1567_v43, 5 }
  0x7d   : > { %v2754_v9 = vcombine.low %v1472_v0, %v1486_v4  ;;  %v1514_v21 = vsel %vm3821_vm2, %v1509_v10, %v1513_v62  ;;  %v1544_v34 = vshrl.u32 %v4087_v20, 16  ;;  %v1547_v35 = vshll.u32 %v4087_v20, 16  ;;  %v3378_v4 = vld [vmem:[%s3791_s25 + $0x108] ss:$8 sps:$4 sm:$0xff]  }
  0x7e   : > { %3097 = vmatpush3.bf16.msra.mxu1 %v3354_v12  ;;  %v1495_v5 = vrot.slane %v1494_v61, 4  ;;  %v1519_v12 = vshll.u32 %v4065_v3, 16  ;;  %v1518_v17 = vrot.slane %v1516_v8, 4  ;;  %v1555_v52 = vrot.slane %v1553_v37, 5  ;;  %v3373_v61 = vld [vmem:[%s4460_s2 + $0x30] sm:$0xff]  }
  0x7f   : > { %2987 = vmatpush3.bf16.msra.mxu0 %v3358_v14  ;;  %3098 = vmatprep.subr.bf16.mxu1 %v3357_v18  ;;  %v4080_v14 = vld [vmem:[%s4460_s2 + $0x18] sm:$0xff]   ;;  %v1546_v41 = vrot.slane %v1544_v34, 4  ;;  %v1549_v42 = vrot.slane %v1547_v35, 5  ;;  %v1564_v56 = vor.u32 %v1563_v46, %v1560_v45 }
  0x80   : > { %3108 = vmatprep.subr.bf16.mxu0 %v4028_v16  ;;  %v1500_v15 = vsel %vm3821_vm2, %v1495_v5, %v1499_v57  ;;  %3100 = vmatprep.mubr.bf16.mxu1 %v2754_v9  ;;  %v1521_v22 = vrot.slane %v1519_v12, 5  ;;  %v3367_v57 = vld [vmem:[%s3791_s25 + $0x70] ss:$8 sps:$4 sm:$0xff]  }
  0x81   : > { %v2755_v27 = vcombine.low %v1500_v15, %v1514_v21  ;;  %v1550_v51 = vor.u32 %v1549_v42, %v1546_v41  ;;  %v1565_v60 = vrot.slane %v1564_v56, 4  ;;  %v3375_v3 = vld [vmem:[%s3791_s25 + $0xd8] ss:$8 sps:$4 sm:$0xff]  }
  0x82   : > { %1861 = vmatmul.mubr.bf16.vlgmr.msra.gmra.mrb[32].mxu0 %v2746_v32  ;;  %3099 = vmatpush3.bf16.msra.mxu1 %v3357_v18  ;;  %v1530_v18 = vshrl.u32 %v4070_v6, 16  ;;  %v1522_v32 = vor.u32 %v1521_v22, %v1518_v17 }
  0x83   : > { %3109 = vmatpush3.bf16.msra.mxu0 %v4028_v16  ;;  %3132 = vmatprep.subr.bf16.mxu1 %v4028_v16  ;;  %v1551_v59 = vrot.slane %v1550_v51, 4 }
  0x84   : > { %3110 = vmatprep.subr.bf16.mxu0 %v4051_v50  ;;  %1868 = vmatprep.mubr.bf16.mxu0 %v3363_v2  ;;  %v1532_v28 = vrot.slane %v1530_v18, 4  ;;  %v1523_v40 = vrot.slane %v1522_v32, 4  ;;  %v2749_v2 = vcombine.low %v4087_v20, %v4092_v25 }
  0x85   : > { %3101 = vmatmul.mubr.bf16.vlgmr.msra.gmra.mrb[0].mxu1 %v2755_v27  ;;  %v1556_v62 = vsel %vm3821_vm2, %v1551_v59, %v1555_v52 }
  0x86   : > { %v1536_v36 = vor.u32 %v1535_v29, %v1532_v28  ;;  %3140 = vmatpush3.bf16.msra.mxu1 %v4028_v16  ;;  %v3370_v16 = vld [vmem:[%s4460_s2 + $0x28] sm:$0xff]   ;;  %v1528_v48 = vsel %vm3821_vm2, %v1523_v40, %v1527_v23 }
  0x87   : > { %3111 = vmatpush3.bf16.msra.mxu0 %v4051_v50  ;;  %3133 = vmatprep.subr.bf16.mxu1 %v4051_v50 }
  0x88   : > { %3112 = vmatprep.subr.bf16.mxu0 %v4056_v55  ;;  %v1537_v44 = vrot.slane %v1536_v36, 4 }
  0x8a   : > { %1869 = vmatmul.mubr.bf16.gmra.mrb[36].mxu0 %v2747_v63  ;;  %v1542_v54 = vsel %vm3821_vm2, %v1537_v44, %v1541_v33  ;;  %3141 = vmatpush3.bf16.msra.mxu1 %v4051_v50  ;;  %v3371_v63 = vld [vmem:[%s3791_s25 + $0x80] ss:$8 sps:$4 sm:$0xff]   ;;  %v1570_v50 = vsel %vm3821_vm2, %v1565_v60, %v1569_v53 }
  0x8b   : > { %3113 = vmatpush3.bf16.msra.mxu0 %v4056_v55  ;;  %v2756_v58 = vcombine.low %v1528_v48, %v1542_v54  ;;  %3134 = vmatprep.subr.bf16.mxu1 %v4056_v55  ;;  %v2757_v0 = vcombine.low %v1556_v62, %v1570_v50 }
  0x8c   : > { %3114 = vmatprep.subr.bf16.mxu0 %v4080_v14  ;;  %1876 = vmatprep.mubr.bf16.mxu0 %v3367_v57 }
  0x8d   : > { %3104 = vmatprep.mubr.bf16.mxu1 %v2756_v58 }
  0x8e   : > { %3142 = vmatpush3.bf16.msra.mxu1 %v4056_v55  ;;  %v3376_v55 = vld [vmem:[%s3791_s25 + $0xe8] ss:$8 sps:$4 sm:$0xff]   ;;  %s4151_s25 = sand.u32 1, %s3593_s28  }
  0x8f   : > { %3115 = vmatpush3.bf16.msra.mxu0 %v4080_v14  ;;  %3135 = vmatprep.subr.bf16.mxu1 %v4080_v14  ;;  %s2563_s21 = sshll.u32 %s4151_s25, 6 }
  0x90   : > { %3116 = vmatprep.subr.bf16.mxu0 %v4098_v26  ;;  %3105 = vmatmul.mubr.bf16.gmra.mrb[4].mxu1 %v2757_v0  ;;  %s4156_s22 = scalar_lea.vmem [#allocation2], %s2563_s21  ;;  %s4180_s12 = scalar_lea.vmem [#allocation7], %s2563_s21 }
  0x91   : > { %3128 = vmatprep.mubr.bf16.mxu1 %v3377_v49  ;;  %s2255_s23 = sshll.u32 %s4156_s22, 4  ;;  %s3383_s21 = sshll.u32 %s3611_s20, 4  ;;  %s4176_s23 = int_to_ptr.vmem [resolvable:$true] %s2255_s23  ;;  %s3384_s21 = int_to_ptr.vmem [resolvable:$false] %s3383_s21 }
  0x92   : > { %1877 = vmatmul.mubr.bf16.gmra.mrb[40].mxu0 %v2748_v47  ;;  %3143 = vmatpush3.bf16.msra.mxu1 %v4080_v14  ;;  %s3379_s24 = scalar_lea.vmem %s4176_s23, 1024  ;;  %s3385_s26 = scalar_lea.vmem %s3384_s21, 2048 }
  0x93   : > { %3117 = vmatpush3.bf16.msra.mxu0 %v4098_v26  ;;  %1884 = vmatprep.mubr.bf16.mxu0 %v3371_v63  ;;  %p3380_p12 = scmp.ne.s32.totalorder %s4176_s23, %s3379_s24  ;;  %p3386_p1 = scmp.lt.s32.totalorder %s4176_s23, %s3384_s21 }
  0x94   : > { %3118 = vmatprep.subr.bf16.mxu0 %v3370_v16  ;;  %3136 = vmatprep.subr.bf16.mxu1 %v4098_v26  ;;  %p3387_p2 = scmp.lt.s32.totalorder %s3385_s26, %s3379_s24 }
  0x95   : > { %p3381_p13 = pnand %p3380_p12, %p3706_p4 }
  0x96   : > { %3144 = vmatpush3.bf16.msra.mxu1 %v4098_v26  ;;  %p3388_p3 = por %p3387_p2, %p3386_p1 }
  0x97   : > { %3119 = vmatpush3.bf16.msra.mxu0 %v3370_v16  ;;  %3137 = vmatprep.subr.bf16.mxu1 %v3370_v16  ;;  %p3382_p0 = pneg %p3381_p13 }
  0x98   : > { %3120 = vmatprep.subr.bf16.mxu0 %v3373_v61 }
  0x99   : > { %p3389_p5 = pnand %p3388_p3, %p3382_p0 }
  0x9a   : > { %1885 = vmatmul.mubr.bf16.gmra.mrb[44].mxu0 %v2749_v2  ;;  %3145 = vmatpush3.bf16.msra.mxu1 %v3370_v16 }
  0x9b   : > { %3121 = vmatpush3.bf16.msra.mxu0 %v3373_v61  ;;  %3124 = vmatprep.mubr.bf16.mxu0 %v3375_v3 }
  0x9c   : > { %3122 = vmatprep.subr.bf16.mxu0 %v3374_v1  ;;  %3138 = vmatprep.subr.bf16.mxu1 %v3373_v61 }
  0x9e   : > { %3146 = vmatpush3.bf16.msra.mxu1 %v3373_v61 }
  0x9f   : > { %3123 = vmatpush3.bf16.msra.mxu0 %v3374_v1  ;;  %3139 = vmatprep.subr.bf16.mxu1 %v3374_v1 }
  0xa2   : > { %3125 = vmatmul.mubr.bf16.vlgmr.msra.gmra.mrb[48].mxu0 %v3376_v55  ;;  %3147 = vmatpush3.bf16.msra.mxu1 %v3374_v1 }
  0xa5   : > { %3129 = vmatmul.mubr.bf16.vlgmr.msra.gmra.mrb[8].mxu1 %v3378_v4 }
 0x115   : > { %v2884_v5 = vpop.f32.mrb[0].mxu0 }
 0x116   : > { %v2885_v6 = vpop.f32.mrb[1].mxu0 }
 0x117   : > { %v2886_v7 = vadd.f32 %v2885_v6, %v2884_v5  ;;  %v2887_v8 = vpop.f32.mrb[2].mxu0 }
 0x118   : > { %v2888_v9 = vpop.f32.mrb[3].mxu0 }
 0x119   : > { %v2889_v10 = vadd.f32 %v2888_v9, %v2887_v8 }
 0x11d   : > { %v2890_v11 = vpop.f32.mrb[4].mxu0 }
 0x11e   : > { %v2891_v12 = vpop.f32.mrb[5].mxu0 }
 0x11f   : > { %v2892_v13 = vadd.f32 %v2891_v12, %v2890_v11  ;;  %v2893_v14 = vpop.f32.mrb[6].mxu0 }
 0x120   : > { %v2894_v15 = vpop.f32.mrb[7].mxu0 }
 0x121   : > { %v2895_v17 = vadd.f32 %v2894_v15, %v2893_v14 }
 0x125   : > { %v2896_v18 = vpop.f32.mrb[8].mxu0 }
 0x126   : > { %v2897_v19 = vpop.f32.mrb[9].mxu0 }
 0x127   : > { %v2898_v20 = vadd.f32 %v2897_v19, %v2896_v18  ;;  %v2899_v21 = vpop.f32.mrb[10].mxu0 }
 0x128   : > { %v2900_v22 = vpop.f32.mrb[11].mxu0 }
 0x129   : > { %v2901_v23 = vadd.f32 %v2900_v22, %v2899_v21 }
 0x12d   : > { %v2902_v24 = vpop.f32.mrb[12].mxu0 }
 0x12e   : > { %v2903_v25 = vpop.f32.mrb[13].mxu0 }
 0x12f   : > { %v2904_v26 = vadd.f32 %v2903_v25, %v2902_v24  ;;  %v2905_v27 = vpop.f32.mrb[14].mxu0 }
 0x130   : > { %v2906_v28 = vpop.f32.mrb[15].mxu0 }
 0x131   : > { %v2907_v29 = vadd.f32 %v2906_v28, %v2905_v27 }
 0x135   : > { %v2936_v30 = vpop.f32.mrb[16].mxu0 }
 0x136   : > { %v2937_v31 = vpop.f32.mrb[17].mxu0 }
 0x137   : > { %v2938_v32 = vadd.f32 %v2937_v31, %v2936_v30  ;;  %v2939_v33 = vpop.f32.mrb[18].mxu0 }
 0x138   : > { %v2940_v34 = vpop.f32.mrb[19].mxu0 }
 0x139   : > { %v3151_v35 = vadd.f32 %v2938_v32, %v2886_v7  ;;  %v2941_v36 = vadd.f32 %v2940_v34, %v2939_v33 }
 0x13b   : > { %v3157_v37 = vadd.f32 %v2941_v36, %v2889_v10 }
 0x13d   : > { %v2942_v38 = vpop.f32.mrb[20].mxu0 }
 0x13e   : > { %v2943_v39 = vpop.f32.mrb[21].mxu0 }
 0x13f   : > { %v2944_v40 = vadd.f32 %v2943_v39, %v2942_v38  ;;  %v2945_v41 = vpop.f32.mrb[22].mxu0 }
 0x140   : > { %v2946_v42 = vpop.f32.mrb[23].mxu0 }
 0x141   : > { %v3148_v43 = vadd.f32 %v2944_v40, %v2892_v13  ;;  %v2947_v44 = vadd.f32 %v2946_v42, %v2945_v41 }
 0x143   : > { %v3154_v45 = vadd.f32 %v2947_v44, %v2895_v17 }
 0x145   : > { %v2948_v46 = vpop.f32.mrb[24].mxu0 }
 0x146   : > { %v2949_v47 = vpop.f32.mrb[25].mxu0 }
 0x147   : > { %v2950_v16 = vadd.f32 %v2949_v47, %v2948_v46  ;;  %v2951_v48 = vpop.f32.mrb[26].mxu0 }
 0x148   : > { %v2952_v51 = vpop.f32.mrb[27].mxu0 }
 0x149   : > { %v3163_v52 = vadd.f32 %v2950_v16, %v2898_v20  ;;  %v2953_v53 = vadd.f32 %v2952_v51, %v2951_v48 }
 0x14b   : > { %v3169_v54 = vadd.f32 %v2953_v53, %v2901_v23 }
 0x14d   : > { %v2954_v56 = vpop.f32.mrb[28].mxu0 }
 0x14e   : > { %v2955_v57 = vpop.f32.mrb[29].mxu0 }
 0x14f   : > { %v2956_v58 = vadd.f32 %v2955_v57, %v2954_v56  ;;  %v2957_v59 = vpop.f32.mrb[30].mxu0 }
 0x150   : > { %v2958_v60 = vpop.f32.mrb[31].mxu0 }
 0x151   : > { %v4146_v61 = vadd.f32 %v2956_v58, %v2904_v26  ;;  %v2959_v62 = vadd.f32 %v2958_v60, %v2957_v59 }
 0x153   : > { %v4148_v63 = vadd.f32 %v2959_v62, %v2907_v29 }
 0x155   : > { %v2988_v50 = vpop.f32.mrb[32].mxu0 }
 0x156   : > { %v2989_v0 = vpop.f32.mrb[33].mxu0 }
 0x157   : > { %v2990_v1 = vadd.f32 %v2989_v0, %v2988_v50  ;;  %v2991_v2 = vpop.f32.mrb[34].mxu0 }
 0x158   : > { %v2992_v49 = vpop.f32.mrb[35].mxu0  ;;  %v3102_v10 = vpop.f32.mrb[0].mxu1 }
 0x159   : > { %v3152_v3 = vadd.f32 %v3151_v35, %v2990_v1  ;;  %v2993_v55 = vadd.f32 %v2992_v49, %v2991_v2  ;;  %v1927_v13 = vpop.f32.mrb[1].mxu1 }
 0x15a   : > { %v3103_v15 = vpop.f32.mrb[2].mxu1 }
 0x15b   : > { %v3158_v4 = vadd.f32 %v3157_v37, %v2993_v55  ;;  %v3153_v14 = vadd.f32 %v3152_v3, %v1927_v13  ;;  %v1930_v19 = vpop.f32.mrb[3].mxu1 }
 0x15d   : > { %v2994_v5 = vpop.f32.mrb[36].mxu0  ;;  %1966 = vst [vmem:[%s4156_s22] sm:$0xff] %v3153_v14  ;;  %v3159_v20 = vadd.f32 %v3158_v4, %v1930_v19  ;;  %v1988_v22 = vmul.f32 %v3153_v14, %v3153_v14 }
 0x15e   : > { %v2995_v6 = vpop.f32.mrb[37].mxu0 }
 0x15f   : > { %v2996_v7 = vadd.f32 %v2995_v6, %v2994_v5  ;;  %v2997_v8 = vpop.f32.mrb[38].mxu0  ;;  %1967 = vst [vmem:[%s4156_s22 + $0x8] sm:$0xff] %v3159_v20  ;;  %v1974_v23 = vadd.f32 %v3159_v20, %v3153_v14  ;;  %v1989_v24 = vmul.f32 %v3159_v20, %v3159_v20 }
 0x160   : > { %v2998_v9 = vpop.f32.mrb[39].mxu0 }
 0x161   : > { %v3149_v11 = vadd.f32 %v3148_v43, %v2996_v7  ;;  %v2999_v12 = vadd.f32 %v2998_v9, %v2997_v8  ;;  %v1996_v27 = vadd.f32 %v1989_v24, %v1988_v22 }
 0x163   : > { %v3150_v17 = vadd.f32 %v3149_v11, %v3102_v10  ;;  %v3155_v18 = vadd.f32 %v3154_v45, %v2999_v12  ;;  %v3106_v36 = vpop.f32.mrb[4].mxu1 }
 0x164   : > { %v1943_v39 = vpop.f32.mrb[5].mxu1 }
 0x165   : > { %1968 = vst [vmem:[%s4156_s22 + $0x10] sm:$0xff] %v3150_v17  ;;  %v3156_v21 = vadd.f32 %v3155_v18, %v3103_v15  ;;  %v1990_v25 = vmul.f32 %v3150_v17, %v3150_v17  ;;  %v3000_v26 = vpop.f32.mrb[40].mxu0  ;;  %v1975_v28 = vadd.f32 %v3150_v17, %v1974_v23  ;;  %v3107_v41 = vpop.f32.mrb[6].mxu1 }
 0x166   : > { %v3001_v30 = vpop.f32.mrb[41].mxu0  ;;  %v1946_v44 = vpop.f32.mrb[7].mxu1 }
 0x167   : > { %1969 = vst [vmem:[%s4156_s22 + $0x18] sm:$0xff] %v3156_v21  ;;  %v1991_v29 = vmul.f32 %v3156_v21, %v3156_v21  ;;  %v3002_v31 = vadd.f32 %v3001_v30, %v3000_v26  ;;  %v3003_v32 = vpop.f32.mrb[42].mxu0  ;;  %v1997_v33 = vadd.f32 %v1996_v27, %v1990_v25  ;;  %v1976_v34 = vadd.f32 %v3156_v21, %v1975_v28 }
 0x168   : > { %v3004_v35 = vpop.f32.mrb[43].mxu0 }
 0x169   : > { %v3164_v37 = vadd.f32 %v3163_v52, %v3002_v31  ;;  %v3005_v38 = vadd.f32 %v3004_v35, %v3003_v32  ;;  %v1998_v40 = vadd.f32 %v1997_v33, %v1991_v29 }
 0x16b   : > { %v3165_v42 = vadd.f32 %v3164_v37, %v1943_v39  ;;  %v3170_v43 = vadd.f32 %v3169_v54, %v3005_v38 }
 0x16d   : > { %1970 = vst [vmem:[%s4156_s22 + $0x20] sm:$0xff] %v3165_v42  ;;  %v1977_v45 = vadd.f32 %v3165_v42, %v1976_v34  ;;  %v1992_v46 = vmul.f32 %v3165_v42, %v3165_v42  ;;  %v3171_v47 = vadd.f32 %v3170_v43, %v1946_v44  ;;  %v3006_v16 = vpop.f32.mrb[44].mxu0 }
 0x16e   : > { %v3007_v48 = vpop.f32.mrb[45].mxu0 }
 0x16f   : > { %v1999_v51 = vadd.f32 %v1998_v40, %v1992_v46  ;;  %1971 = vst [vmem:[%s4156_s22 + $0x28] sm:$0xff] %v3171_v47  ;;  %v1978_v53 = vadd.f32 %v3171_v47, %v1977_v45  ;;  %v1993_v52 = vmul.f32 %v3171_v47, %v3171_v47  ;;  %v3008_v56 = vadd.f32 %v3007_v48, %v3006_v16  ;;  %v3009_v57 = vpop.f32.mrb[46].mxu0 }
 0x170   : > { %v3010_v58 = vpop.f32.mrb[47].mxu0 }
 0x171   : > { %v2000_v54 = vadd.f32 %v1999_v51, %v1993_v52  ;;  %v3161_v59 = vadd.f32 %v4146_v61, %v3008_v56  ;;  %v3011_v60 = vadd.f32 %v3010_v58, %v3009_v57 }
 0x173   : > { %v3162_v62 = vadd.f32 %v3161_v59, %v3106_v36  ;;  %v3167_v50 = vadd.f32 %v4148_v63, %v3011_v60 }
 0x175   : > { %1972 = vst [vmem:[%s4156_s22 + $0x30] sm:$0xff] %v3162_v62  ;;  %v1979_v0 = vadd.f32 %v3162_v62, %v1978_v53  ;;  %v1994_v1 = vmul.f32 %v3162_v62, %v3162_v62  ;;  %v3168_v2 = vadd.f32 %v3167_v50, %v3107_v41  ;;  %v3126_v49 = vpop.f32.mrb[48].mxu0 }
 0x176   : > { %2173 = vst [vmem:[%s4180_s12 + $0x10] sm:$0xff] %v3126_v49  ;;  %v2140_v61 = vpop.f32.mrb[49].mxu0 }
 0x177   : > { %v2001_v63 = vadd.f32 %v2000_v54, %v1994_v1  ;;  %1973 = vst [vmem:[%s4156_s22 + $0x38] sm:$0xff] %v3168_v2  ;;  %v1980_v3 = vadd.f32 %v3168_v2, %v1979_v0  ;;  %v1995_v55 = vmul.f32 %v3168_v2, %v3168_v2  ;;  %2171 = vst [vmem:[%s4180_s12] sm:$0xff] %v2140_v61  ;;  %v3127_v4 = vpop.f32.mrb[50].mxu0 }
 0x178   : > { %v2193_v5 = vmul.f32 %v2140_v61, %v2140_v61  ;;  %2174 = vst [vmem:[%s4180_s12 + $0x18] sm:$0xff] %v3127_v4  ;;  %v2143_v6 = vpop.f32.mrb[51].mxu0 }
 0x179   : > { %3392 = shalt.err (!%p3389_p5)
}
 0x17a   : > { %s3393_s22 = scalar_lea.hbm %s4174_s19, 1024  ;;  %s3397_s20 = scalar_lea.hbm %s4461_s3, 2048 }
 0x17b   : > { %p3394_p6 = scmp.ne.s32.totalorder %s4174_s19, %s3393_s22  ;;  %p3398_p10 = scmp.lt.u32.totalorder %s4174_s19, %s4461_s3 }
 0x17c   : > { %p3399_p11 = scmp.lt.u32.totalorder %s3397_s20, %s3393_s22  ;;  %p3401_p13 = scmp.lt.u32.totalorder %s3393_s22, %s4174_s19 }
 0x17d   : > { %p3395_p7 = pnand %p3394_p6, %p3706_p4 }
 0x17e   : > { %p3400_p12 = por %p3399_p11, %p3398_p10 }
 0x17f   : > { %p3396_p9 = pneg %p3395_p7 }
 0x180   : > { %p3402_p0 = por %p3401_p13, %p3400_p12 }
 0x182   : > { %p3403_p1 = pnand %p3402_p0, %p3396_p9 }
 0x184   : > { %3406 = shalt.err (!%p3403_p1)
}
 0x185   : > { %s4444_s24 = smov 128   ;;  %s4445_s14 = smov 8   ;;  %v1981_v7 = vrot.slane %v1980_v3, 4  ;;  %v2002_v8 = vadd.f32 %v2001_v63, %v1995_v55  ;;  %2172 = vst [vmem:[%s4180_s12 + $0x8] sm:$0xff] %v2143_v6  ;;  %v2179_v9 = vadd.f32 %v2143_v6, %v2140_v61  ;;  %v2194_v10 = vmul.f32 %v2143_v6, %v2143_v6  ;;  %v3130_v22 = vpop.f32.mrb[8].mxu1 }
 0x186   : > { %s4462_s11 = scalar_lea.sflag [#allocation3], %s4151_s25  ;;  %v2195_v11 = vmul.f32 %v3126_v49, %v3126_v49  ;;  %s4215_s26 = sshll.u32 %s4151_s25, 3  ;;  %v2196_v17 = vmul.f32 %v3127_v4, %v3127_v4  ;;  %2177 = vst [vmem:[%s4180_s12 + $0x30] sm:$0xff] %v3130_v22  ;;  %v2156_v23 = vpop.f32.mrb[9].mxu1 }
 0x187   : > { %3189 = dma.vmem_to_hbm [thread:$0]  (%p3706_p4), %s4176_s23, 1024, %s4174_s19, %s4462_s11, %s4444_s24, %s4444_s24, %s4445_s14   ;;  %v2003_v12 = vrot.slane %v2002_v8, 4  ;;  %v2180_v13 = vadd.f32 %v3126_v49, %v2179_v9  ;;  %v2201_v14 = vadd.f32 %v2194_v10, %v2193_v5  ;;  %v1982_v15 = vadd.f32 %v1981_v7, %v1980_v3  ;;  %v3131_v29 = vpop.f32.mrb[10].mxu1 }
 0x188   : > { %s4463_s22 = sadd.s32 4294967295, %s3609_s10   ;;  %s2300_s23 = sshll.u32 %s4180_s12, 4  ;;  %2175 = vst [vmem:[%s4180_s12 + $0x20] sm:$0xff] %v2156_v23  ;;  %v2197_v28 = vmul.f32 %v2156_v23, %v2156_v23  ;;  %2178 = vst [vmem:[%s4180_s12 + $0x38] sm:$0xff] %v3131_v29  ;;  %v2159_v30 = vpop.f32.mrb[11].mxu1  ;;  %s4237_s23 = int_to_ptr.vmem [resolvable:$true] %s2300_s23 }
 0x189   : > { %s4219_s16 = sand.u32 1, %s4463_s22   ;;  %v2202_v18 = vadd.f32 %v2201_v14, %v2195_v11  ;;  %v2181_v19 = vadd.f32 %v3127_v4, %v2180_v13  ;;  %v1983_v20 = vrot.slane %v1982_v15, 2  ;;  %v2004_v21 = vadd.f32 %v2003_v12, %v2002_v8  ;;  %s4223_s19 = sshll.u32 %s3601_s30, 7  ;;  %2176 = vst [vmem:[%s4180_s12 + $0x28] sm:$0xff] %v2159_v30 }
 0x18a   : > { %s4446_s20 = scalar_lea.vmem [#allocation4], %s4215_s26  ;;  %s4464_s11 = sshll.u32 %s3601_s30, 10  ;;  %v2198_v35 = vmul.f32 %v2159_v30, %v2159_v30 }
 0x18b   : > { %v2203_v24 = vadd.f32 %v2202_v18, %v2196_v17  ;;  %v1984_v25 = vadd.f32 %v1983_v20, %v1982_v15  ;;  %s2272_s21 = sshll.u32 %s4446_s20, 4  ;;  %v2005_v26 = vrot.slane %v2004_v21, 2  ;;  %v2182_v27 = vadd.f32 %v2181_v19, %v2156_v23  ;;  %s4235_s14 = scalar_lea.hbm %s4438_s6, %s4464_s11  ;;  %s4247_s21 = int_to_ptr.vmem [resolvable:$true] %s2272_s21 }
 0x18c   : > { %s4244_s1 = scalar_lea.hbm %s4436_s4, %s4223_s19  ;;  %s4447_s30 = scalar_lea.vmem [#allocation6], %s4215_s26 }
 0x18d   : > { %v1985_v31 = vrot.slane %v1984_v25, 1  ;;  %v2006_v32 = vadd.f32 %v2005_v26, %v2004_v21  ;;  %v2204_v33 = vadd.f32 %v2203_v24, %v2197_v28  ;;  %v2183_v34 = vadd.f32 %v2182_v27, %v2159_v30  ;;  %s4252_s24 = sshll.u32 %s4447_s30, 4  ;;  %s3407_s22 = scalar_lea.vmem %s4237_s23, 1024  ;;  %s4290_s24 = int_to_ptr.vmem [resolvable:$true] %s4252_s24 }
 0x18e   : > { %p3408_p2 = scmp.ne.s32.totalorder %s4237_s23, %s3407_s22  ;;  %s3614_s0 = smov [#allocation7]  }
 0x18f   : > { %v1986_v36 = vadd.f32 %v1985_v31, %v1984_v25  ;;  %s3411_s20 = sshll.u32 %s3614_s0, 4  ;;  %s3412_s20 = int_to_ptr.vmem [resolvable:$false] %s3411_s20 }
 0x190   : > { %p3409_p3 = pnand %p3408_p2, %p3706_p4  ;;  %s3413_s12 = scalar_lea.vmem %s3412_s20, 2048 }
 0x191   : > { %p3414_p6 = scmp.lt.s32.totalorder %s4237_s23, %s3412_s20  ;;  %p3415_p7 = scmp.lt.s32.totalorder %s3413_s12, %s3407_s22 }
 0x192   : > { %p3410_p5 = pneg %p3409_p3 }
 0x193   : > { %p3416_p9 = por %p3415_p7, %p3414_p6 }
 0x195   : > { %p3417_p10 = pnand %p3416_p9, %p3410_p5 }
 0x197   : > { %3420 = shalt.err (!%p3417_p10)
}
 0x198   : > { %s3421_s30 = scalar_lea.hbm %s4235_s14, 1024  ;;  %s3425_s0 = scalar_lea.hbm %s4438_s6, 2048 }
 0x199   : > { %p3422_p11 = scmp.ne.s32.totalorder %s4235_s14, %s3421_s30  ;;  %p3426_p0 = scmp.lt.u32.totalorder %s4235_s14, %s4438_s6 }
 0x19a   : > { %p3427_p1 = scmp.lt.u32.totalorder %s3425_s0, %s3421_s30  ;;  %p3429_p3 = scmp.lt.u32.totalorder %s3421_s30, %s4235_s14 }
 0x19b   : > { %p3423_p12 = pnand %p3422_p11, %p3706_p4 }
 0x19c   : > { %p3428_p2 = por %p3427_p1, %p3426_p0 }
 0x19d   : > { %p3424_p13 = pneg %p3423_p12 }
 0x19e   : > { %p3430_p5 = por %p3429_p3, %p3428_p2 }
 0x1a0   : > { %p3431_p6 = pnand %p3430_p5, %p3424_p13 }
 0x1a2   : > { %3434 = shalt.err (!%p3431_p6)
}
 0x1a3   : > { %s4465_s22 = smov 8   ;;  %s4466_s12 = smov 128   ;;  %v2007_v37 = vrot.slane %v2006_v32, 1  ;;  %v2199_v38 = vmul.f32 %v3130_v22, %v3130_v22  ;;  %v2184_v39 = vadd.f32 %v3130_v22, %v2183_v34  ;;  %v2205_v40 = vadd.f32 %v2204_v33, %v2198_v35 }
 0x1a4   : > { %s4467_s13 = scalar_lea.sflag [#allocation8], %s4219_s16  ;;  %s4468_s2 = scalar_lea.vmem [#allocation4], %s4215_s26  ;;  %v2200_v42 = vmul.f32 %v3131_v29, %v3131_v29 }
 0x1a5   : > { %3192 = dma.vmem_to_hbm [thread:$0]  (%p3706_p4), %s4237_s23, 1024, %s4235_s14, %s4467_s13, %s4466_s12, %s4466_s12, %s4465_s22   ;;  %v2008_v41 = vadd.f32 %v2007_v37, %v2006_v32  ;;  %v2185_v43 = vadd.f32 %v3131_v29, %v2184_v39  ;;  %v2206_v44 = vadd.f32 %v2205_v40, %v2199_v38 }
 0x1a6   : > { %1987 = vst [vmem:[%s4468_s2] sm:$0xff] %v1986_v36  ;;  %s4287_s11 = scalar_lea.hbm %s4437_s5, %s4223_s19  ;;  %s2221_s0 = scalar_lea.sflag [#allocation5], %s4219_s16 }
 0x1a7   : > { %s3435_s13 = scalar_lea.vmem %s4247_s21, 128  ;;  %s3615_s14 = smov [#allocation4]  }
 0x1a8   : > { %p3436_p7 = scmp.ne.s32.totalorder %s4247_s21, %s3435_s13  ;;  %s3439_s23 = sshll.u32 %s3615_s14, 4  ;;  %s3440_s23 = int_to_ptr.vmem [resolvable:$false] %s3439_s23 }
 0x1a9   : > { %s3441_s20 = scalar_lea.vmem %s3440_s23, 256  ;;  %p3442_p11 = scmp.lt.s32.totalorder %s4247_s21, %s3440_s23 }
 0x1aa   : > { %p3437_p9 = pnand %p3436_p7, %p3706_p4  ;;  %p3443_p12 = scmp.lt.s32.totalorder %s3441_s20, %s3435_s13 }
 0x1ac   : > { %p3438_p10 = pneg %p3437_p9  ;;  %p3444_p13 = por %p3443_p12, %p3442_p11 }
 0x1ae   : > { %p3445_p0 = pnand %p3444_p13, %p3438_p10 }
 0x1b0   : > { %3448 = shalt.err (!%p3445_p0)
}
 0x1b1   : > { %s3449_s22 = scalar_lea.hbm %s4244_s1, 128  ;;  %s3453_s3 = scalar_lea.hbm %s4436_s4, 256 }
 0x1b2   : > { %p3450_p1 = scmp.ne.s32.totalorder %s4244_s1, %s3449_s22  ;;  %p3454_p5 = scmp.lt.u32.totalorder %s4244_s1, %s4436_s4 }
 0x1b3   : > { %p3455_p6 = scmp.lt.u32.totalorder %s3453_s3, %s3449_s22  ;;  %p3457_p9 = scmp.lt.u32.totalorder %s3449_s22, %s4244_s1 }
 0x1b4   : > { %p3451_p2 = pnand %p3450_p1, %p3706_p4 }
 0x1b5   : > { %p3456_p7 = por %p3455_p6, %p3454_p5 }
 0x1b6   : > { %p3452_p3 = pneg %p3451_p2 }
 0x1b7   : > { %p3458_p10 = por %p3457_p9, %p3456_p7 }
 0x1b9   : > { %p3459_p11 = pnand %p3458_p10, %p3452_p3 }
 0x1bb   : > { %3462 = shalt.err (!%p3459_p11)
}
 0x1bc   : > { %3190 = dma.vmem_to_hbm [thread:$0]  (%p3706_p4), %s4247_s21, 128, %s4244_s1, %s2221_s0   ;;  %v2186_v45 = vrot.slane %v2185_v43, 4  ;;  %v2207_v46 = vadd.f32 %v2206_v44, %v2200_v42 }
 0x1bd   : > { %s4469_s13 = scalar_lea.vmem [#allocation6], %s4215_s26  ;;  %s3463_s23 = scalar_lea.vmem %s4290_s24, 128 }
 0x1be   : > { %2009 = vst [vmem:[%s4469_s13] sm:$0xff] %v2008_v41  ;;  %p3464_p12 = scmp.ne.s32.totalorder %s4290_s24, %s3463_s23  ;;  %s3616_s20 = smov [#allocation6]  }
 0x1bf   : > { %s3467_s22 = sshll.u32 %s3616_s20, 4  ;;  %s3468_s22 = int_to_ptr.vmem [resolvable:$false] %s3467_s22 }
 0x1c0   : > { %p3465_p13 = pnand %p3464_p12, %p3706_p4  ;;  %s3469_s12 = scalar_lea.vmem %s3468_s22, 256 }
 0x1c1   : > { %p3470_p1 = scmp.lt.s32.totalorder %s4290_s24, %s3468_s22  ;;  %p3471_p2 = scmp.lt.s32.totalorder %s3469_s12, %s3463_s23 }
 0x1c2   : > { %p3466_p0 = pneg %p3465_p13 }
 0x1c3   : > { %p3472_p3 = por %p3471_p2, %p3470_p1 }
 0x1c5   : > { %p3473_p5 = pnand %p3472_p3, %p3466_p0 }
 0x1c7   : > { %3476 = shalt.err (!%p3473_p5)
}
 0x1c8   : > { %s3477_s1 = scalar_lea.hbm %s4287_s11, 128  ;;  %s3481_s3 = scalar_lea.hbm %s4437_s5, 256 }
 0x1c9   : > { %p3478_p6 = scmp.ne.s32.totalorder %s4287_s11, %s3477_s1  ;;  %p3482_p10 = scmp.lt.u32.totalorder %s4287_s11, %s4437_s5 }
 0x1ca   : > { %p3483_p11 = scmp.lt.u32.totalorder %s3481_s3, %s3477_s1  ;;  %p3485_p13 = scmp.lt.u32.totalorder %s3477_s1, %s4287_s11 }
 0x1cb   : > { %p3479_p7 = pnand %p3478_p6, %p3706_p4 }
 0x1cc   : > { %p3484_p12 = por %p3483_p11, %p3482_p10 }
 0x1cd   : > { %p3480_p9 = pneg %p3479_p7 }
 0x1ce   : > { %p3486_p0 = por %p3485_p13, %p3484_p12 }
 0x1d0   : > { %p3487_p1 = pnand %p3486_p0, %p3480_p9 }
 0x1d2   : > { %3490 = shalt.err (!%p3487_p1)
}
 0x1d3   : > { %3191 = dma.vmem_to_hbm [thread:$0]  (%p3706_p4), %s4290_s24, 128, %s4287_s11, %s2221_s0   ;;  %v2187_v47 = vadd.f32 %v2186_v45, %v2185_v43  ;;  %v2208_v16 = vrot.slane %v2207_v46, 4 }
 0x1d4   : > { %s360_s13 = scalar_lea.vmem [#allocation9], %s4215_s26  ;;  %s367_s20 = scalar_lea.vmem [#allocation10], %s4215_s26 }
 0x1d5   : > { %v2188_v48 = vrot.slane %v2187_v47, 2  ;;  %v2209_v51 = vadd.f32 %v2208_v16, %v2207_v46  ;;  %s2317_s23 = sshll.u32 %s360_s13, 4  ;;  %s2331_s22 = sshll.u32 %s367_s20, 4  ;;  %s4351_s23 = int_to_ptr.vmem [resolvable:$true] %s2317_s23  ;;  %s4359_s22 = int_to_ptr.vmem [resolvable:$true] %s2331_s22 }
 0x1d6   : > { %s4349_s24 = scalar_lea.hbm %s4439_s7, %s4223_s19  ;;  %s4357_s21 = scalar_lea.hbm %s4440_s8, %s4223_s19 }
 0x1d7   : > { %v2189_v53 = vadd.f32 %v2188_v48, %v2187_v47  ;;  %v2210_v52 = vrot.slane %v2209_v51, 2  ;;  %s3491_s2 = scalar_lea.vmem %s4351_s23, 128  ;;  %s3617_s3 = smov [#allocation9]  }
 0x1d8   : > { %p3492_p2 = scmp.ne.s32.totalorder %s4351_s23, %s3491_s2  ;;  %s3495_s30 = sshll.u32 %s3617_s3, 4  ;;  %s3496_s30 = int_to_ptr.vmem [resolvable:$false] %s3495_s30 }
 0x1d9   : > { %v2190_v56 = vrot.slane %v2189_v53, 1  ;;  %v2211_v57 = vadd.f32 %v2210_v52, %v2209_v51  ;;  %s3497_s14 = scalar_lea.vmem %s3496_s30, 256  ;;  %p3498_p6 = scmp.lt.s32.totalorder %s4351_s23, %s3496_s30 }
 0x1da   : > { %p3493_p3 = pnand %p3492_p2, %p3706_p4  ;;  %p3499_p7 = scmp.lt.s32.totalorder %s3497_s14, %s3491_s2 }
 0x1db   : > { %v2191_v58 = vadd.f32 %v2190_v56, %v2189_v53  ;;  %v2212_v54 = vrot.slane %v2211_v57, 1 }
 0x1dc   : > { %p3494_p5 = pneg %p3493_p3  ;;  %p3500_p9 = por %p3499_p7, %p3498_p6 }
 0x1dd   : > { %2192 = vst [vmem:[%s360_s13] sm:$0xff] %v2191_v58  ;;  %v2213_v59 = vadd.f32 %v2212_v54, %v2211_v57 }
 0x1de   : > { %p3501_p10 = pnand %p3500_p9, %p3494_p5 }
 0x1e0   : > { %3504 = shalt.err (!%p3501_p10)
}
 0x1e1   : > { %s3505_s19 = scalar_lea.hbm %s4349_s24, 128  ;;  %s3509_s1 = scalar_lea.hbm %s4439_s7, 256 }
 0x1e2   : > { %p3506_p11 = scmp.ne.s32.totalorder %s4349_s24, %s3505_s19  ;;  %p3510_p0 = scmp.lt.u32.totalorder %s4349_s24, %s4439_s7 }
 0x1e3   : > { %p3511_p1 = scmp.lt.u32.totalorder %s3509_s1, %s3505_s19  ;;  %p3513_p3 = scmp.lt.u32.totalorder %s3505_s19, %s4349_s24 }
 0x1e4   : > { %p3507_p12 = pnand %p3506_p11, %p3706_p4 }
 0x1e5   : > { %p3512_p2 = por %p3511_p1, %p3510_p0 }
 0x1e6   : > { %p3508_p13 = pneg %p3507_p12 }
 0x1e7   : > { %p3514_p5 = por %p3513_p3, %p3512_p2 }
 0x1e9   : > { %p3515_p6 = pnand %p3514_p5, %p3508_p13 }
 0x1eb   : > { %3518 = shalt.err (!%p3515_p6)
}
 0x1ec   : > { %s4470_s2 = scalar_lea.sflag [#allocation8], %s4219_s16  ;;  %2214 = vst [vmem:[%s367_s20] sm:$0xff] %v2213_v59  ;;  %s2241_s3 = scalar_lea.sflag [#allocation11], %s4151_s25 }
 0x1ed   : > { %3193 = dma.vmem_to_hbm [thread:$0]  (%p3706_p4), %s4351_s23, 128, %s4349_s24, %s4470_s2  }
 0x1ee   : > { %s3519_s30 = scalar_lea.vmem %s4359_s22, 128  ;;  %s3618_s14 = smov [#allocation10]  }
 0x1ef   : > { %p3520_p7 = scmp.ne.s32.totalorder %s4359_s22, %s3519_s30  ;;  %s3523_s19 = sshll.u32 %s3618_s14, 4  ;;  %s3524_s19 = int_to_ptr.vmem [resolvable:$false] %s3523_s19 }
 0x1f0   : > { %s3525_s16 = scalar_lea.vmem %s3524_s19, 256  ;;  %p3526_p11 = scmp.lt.s32.totalorder %s4359_s22, %s3524_s19 }
 0x1f1   : > { %p3521_p9 = pnand %p3520_p7, %p3706_p4  ;;  %p3527_p12 = scmp.lt.s32.totalorder %s3525_s16, %s3519_s30 }
 0x1f3   : > { %p3522_p10 = pneg %p3521_p9  ;;  %p3528_p13 = por %p3527_p12, %p3526_p11 }
 0x1f5   : > { %p3529_p0 = pnand %p3528_p13, %p3522_p10 }
 0x1f7   : > { %3532 = shalt.err (!%p3529_p0)
}
 0x1f8   : > { %s3533_s25 = scalar_lea.hbm %s4357_s21, 128  ;;  %s3537_s20 = scalar_lea.hbm %s4440_s8, 256 }
 0x1f9   : > { %p3534_p1 = scmp.ne.s32.totalorder %s4357_s21, %s3533_s25  ;;  %p3538_p5 = scmp.lt.u32.totalorder %s4357_s21, %s4440_s8 }
 0x1fa   : > { %p3539_p6 = scmp.lt.u32.totalorder %s3537_s20, %s3533_s25  ;;  %p3541_p9 = scmp.lt.u32.totalorder %s3533_s25, %s4357_s21 }
 0x1fb   : > { %p3535_p2 = pnand %p3534_p1, %p3706_p4 }
 0x1fc   : > { %p3540_p7 = por %p3539_p6, %p3538_p5 }
 0x1fd   : > { %p3536_p3 = pneg %p3535_p2 }
 0x1fe   : > { %p3542_p10 = por %p3541_p9, %p3540_p7 }
 0x200   : > { %p3543_p11 = pnand %p3542_p10, %p3536_p3 }
 0x202   : > { %3546 = shalt.err (!%p3543_p11)
}
 0x203   : > { %3194 = dma.vmem_to_hbm [thread:$0]  (%p3706_p4), %s4359_s22, 128, %s4357_s21, %s2241_s3  }
 0x204 PF: > { %p3220_p12 = scmp.ge.s32.totalorder %s3609_s10, 2  ;;  %s2343_s12 = sand.u32 1, %s3589_s27  }
 0x205   : > { %s2344_s1 = scalar_lea.sflag [#allocation3], %s2343_s12 }
 0x206   : > { %p3202_p13 = pnand %p3220_p12, %p3715_p8 }
 0x208   : > { %3572 = dma.done.wait (!%p3202_p13), %s2344_s1, 1024  }
 0x209   : > { %3574 = vsyncadd (!%p3202_p13), %s2344_s1, 4294966272  ;;  %s4471_s11 = sadd.s32 4294967294, %s3609_s10  }
 0x20a   : > { %s2352_s0 = sand.u32 1, %s4471_s11  }
 0x20b   : > { %s2353_s2 = scalar_lea.sflag [#allocation5], %s2352_s0 }
 0x20c   : > { %3576 = dma.done.wait (!%p3202_p13), %s2353_s2, 256  }
 0x20d   : > { %3578 = vsyncadd (!%p3202_p13), %s2353_s2, 4294967040  ;;  %s2371_s15 = scalar_lea.sflag [#allocation8], %s2352_s0 }
 0x20e   : > { %3580 = dma.done.wait (!%p3202_p13), %s2371_s15, 1152  }
 0x20f   : > { %3582 = vsyncadd (!%p3202_p13), %s2371_s15, 4294966144  ;;  %s2389_s22 = scalar_lea.sflag [#allocation11], %s2343_s12 }
 0x210   : > { %3584 = dma.done.wait (!%p3202_p13), %s2389_s22, 128  }
 0x211   : > { %3586 = vsyncadd (!%p3202_p13), %s2389_s22, 4294967168  ;;  %s31_s10 = sadd.s32 1, %s3609_s10   ;;  %s4472_s17 = sld [smem:[#allocation16_spill]] }
 0x212   : > { %p28_p4 = scmp.ge.s32.totalorder %s31_s10, 4   ;;  %s4473_s27 = smov %s3593_s28 }
 0x213   : > { %s4474_s28 = smov %s3597_s29  ;;  %s4475_s29 = smov %s3721_s18 }
 0x214   : > { %s4476_s30 = smov %s3605_s9  ;;  %30 = sbr.rel (!%p28_p4) target bundleno = 15 (0xf), region = 155 }
 0x217   : > { %s4477_s9 = smov %s4472_s17 }
 0x21b   :  { %2394 = vsyncpa [#allocation3], 1 }
 0x21c   :  { %2396 = vsyncpa [#allocation3 + $0x1], 1 }
 0x21d   :  { %2397 = vsyncpa [#allocation5], 1 }
 0x21e   :  { %2399 = vsyncpa [#allocation5 + $0x1], 1 }
 0x21f   :  { %2400 = vsyncpa [#allocation8], 1 }
 0x220   :  { %2402 = vsyncpa [#allocation8 + $0x1], 1 }
 0x221   :  { %2403 = vsyncpa [#allocation11], 1 }
 0x222   :  { %2405 = vsyncpa [#allocation11 + $0x1], 1 }

</bundles_post_ra>
